<compile_context>
chip_gen: v7x
topology: tpu7x:2x2x1
jax: 0.10.0
libtpu: 0.0.40
codegen_flags: <defaults>
</compile_context>

<pallas_src>
import jax
import jax.numpy as jnp
from jax.experimental import pallas as pl
from jax.experimental.pallas import tpu as pltpu

# --- small, BERT-like hyperparameters ---------------------------------------
B, S, H = 2, 8, 32          # batch, sequence length, hidden size
NH, DH = 4, 8               # num heads, head dim (NH * DH == H)
FF = 64                     # FFN intermediate size
NUM_LAYERS = 2
VOCAB = 100
MAX_POS = 16
LN_EPS = 1e-12              # BERT layernorm eps


# --- in-kernel helpers --------------------------------------------------------
def _layernorm(x, g, b):
    mu = jnp.mean(x, axis=-1, keepdims=True)
    var = jnp.mean((x - mu) ** 2, axis=-1, keepdims=True)
    return (x - mu) * jax.lax.rsqrt(var + LN_EPS) * g + b


def _split_heads(x2d, col_off):
    # x2d: (B*S, 3H). Slice one head's lanes, regroup to (B, S, DH), stack heads
    # along the leading (untiled) dim -> (NH*B, S, DH), head-major.
    return jnp.concatenate(
        [x2d[:, col_off + h * DH: col_off + (h + 1) * DH].reshape(B, S, DH)
         for h in range(NH)],
        axis=0)


def _merge_heads(ctx):
    # ctx: (NH*B, S, DH) head-major -> (B*S, H)
    return jnp.concatenate(
        [ctx[h * B:(h + 1) * B].reshape(B * S, DH) for h in range(NH)],
        axis=-1)


# --- fused Pallas kernel ------------------------------------------------------
def fused_style_encoder_kernel(x_ref, emb_g_ref, emb_b_ref,
                               wqkv_ref, bqkv_ref, wao_ref, bao_ref,
                               g1_ref, b1_ref,
                               wfi_ref, bfi_ref, wfo_ref, bfo_ref,
                               g2_ref, b2_ref,
                               o_ref):
    # x_ref: (B*S, H) embedding sums; everything stays in VMEM for the whole forward.
    x = _layernorm(x_ref[...].astype(jnp.float32), emb_g_ref[...], emb_b_ref[...])
    scale = 1.0 / (DH ** 0.5)

    for l in range(NUM_LAYERS):   # static unrolled loop; weights indexed by layer
        # Fused QKV projection: one (B*S, H) x (H, 3H) matmul (bf16 MXU, f32 accumulation).
        qkv = jnp.dot(x.astype(jnp.bfloat16), wqkv_ref[l],
                      preferred_element_type=jnp.float32) + bqkv_ref[l]     # (B*S, 3H)

        q = _split_heads(qkv, 0)          # (NH*B, S, DH)
        k = _split_heads(qkv, H)
        v = _split_heads(qkv, 2 * H)

        # Batched multi-head attention over the merged (NH*B) axis; softmax in f32.
        # (No attention mask, matching bert(input_ids) with default all-ones mask.)
        s = jnp.einsum('zqd,zkd->zqk', q, k,
                       preferred_element_type=jnp.float32) * scale          # (NH*B, S, S)
        s = s - jnp.max(s, axis=-1, keepdims=True)
        p = jnp.exp(s)
        p = p * pl.reciprocal(jnp.sum(p, axis=-1, keepdims=True), approx=True)
        ctx = jnp.einsum('zqk,zkd->zqd', p, v,
                         preferred_element_type=jnp.float32)                # (NH*B, S, DH)
        ctx = _merge_heads(ctx)                                             # (B*S, H)

        attn = jnp.dot(ctx.astype(jnp.bfloat16), wao_ref[l],
                       preferred_element_type=jnp.float32) + bao_ref[l]
        x = _layernorm(x + attn, g1_ref[l], b1_ref[l])

        # Feed-forward
        ff = jnp.dot(x.astype(jnp.bfloat16), wfi_ref[l],
                     preferred_element_type=jnp.float32) + bfi_ref[l]
        # TODO(synk): BERT uses exact erf-GELU; tanh-approximate GELU used here.
        ff = jax.nn.gelu(ff, approximate=True)
        ff = jnp.dot(ff.astype(jnp.bfloat16), wfo_ref[l],
                     preferred_element_type=jnp.float32) + bfo_ref[l]
        x = _layernorm(x + ff, g2_ref[l], b2_ref[l])

    # last_hidden_states[:, 0, :] : rows {0, S, 2S, ...} of the flat (B*S, H) slab.
    cls = jnp.concatenate([x[b * S:b * S + 1, :] for b in range(B)], axis=0)  # (B, H)
    o_ref[...] = cls.astype(o_ref.dtype)


# --- wrappers -----------------------------------------------------------------
def _full_spec(shape):
    nd = len(shape)
    return pl.BlockSpec(shape, lambda i, _nd=nd: (0,) * _nd)


def init_params(key):
    keys = iter(jax.random.split(key, 32))

    def rnd(shape, dtype):
        return (0.02 * jax.random.normal(next(keys), shape, jnp.float32)).astype(dtype)

    params = {
        'word_emb': rnd((VOCAB, H), jnp.float32),
        'pos_emb': rnd((MAX_POS, H), jnp.float32),
        'type_emb': rnd((2, H), jnp.float32),
        'emb_ln_g': jnp.ones((1, H), jnp.float32),
        'emb_ln_b': jnp.zeros((1, H), jnp.float32),
    }

    wqkv, wao, wfi, wfo = [], [], [], []
    for _ in range(NUM_LAYERS):
        wq = rnd((H, H), jnp.bfloat16)
        wk = rnd((H, H), jnp.bfloat16)
        wv = rnd((H, H), jnp.bfloat16)
        wqkv.append(jnp.concatenate([wq, wk, wv], axis=1))     # (H, 3H) stacked QKV
        wao.append(rnd((H, H), jnp.bfloat16))
        wfi.append(rnd((H, FF), jnp.bfloat16))
        wfo.append(rnd((FF, H), jnp.bfloat16))

    L = NUM_LAYERS
    params.update({
        'w_qkv': jnp.stack(wqkv), 'b_qkv': jnp.zeros((L, 1, 3 * H), jnp.float32),
        'w_ao': jnp.stack(wao),   'b_ao': jnp.zeros((L, 1, H), jnp.float32),
        'ln1_g': jnp.ones((L, 1, H), jnp.float32),
        'ln1_b': jnp.zeros((L, 1, H), jnp.float32),
        'w_fi': jnp.stack(wfi),   'b_fi': jnp.zeros((L, 1, FF), jnp.float32),
        'w_fo': jnp.stack(wfo),   'b_fo': jnp.zeros((L, 1, H), jnp.float32),
        'ln2_g': jnp.ones((L, 1, H), jnp.float32),
        'ln2_b': jnp.zeros((L, 1, H), jnp.float32),
    })
    return params


def style_encoder_forward(input_ids, params):
    # Embedding lookups are pure gathers -> plain JAX glue; everything else is fused.
    we = jnp.take(params['word_emb'], input_ids, axis=0)                 # (B, S, H)
    pe = params['pos_emb'][:input_ids.shape[1]][None, :, :]              # (1, S, H)
    te = params['type_emb'][0][None, None, :]                            # (1, 1, H)
    emb = (we + pe + te).astype(jnp.float32).reshape(B * S, H)           # flat (B*S, H)

    weights = [params['emb_ln_g'], params['emb_ln_b'],
               params['w_qkv'], params['b_qkv'], params['w_ao'], params['b_ao'],
               params['ln1_g'], params['ln1_b'],
               params['w_fi'], params['b_fi'], params['w_fo'], params['b_fo'],
               params['ln2_g'], params['ln2_b']]

    flops_per_layer = (2 * B * S * H * (3 * H + H + 2 * FF)      # QKV + out-proj + FFN
                       + 2 * 2 * NH * B * S * S * DH)            # scores + context
    cost = pl.CostEstimate(
        flops=NUM_LAYERS * flops_per_layer,
        transcendentals=NUM_LAYERS * (NH * B * S * S + B * S * FF),
        bytes_accessed=int(emb.nbytes) + sum(int(w.nbytes) for w in weights) + B * H * 4,
    )

    cls = pl.pallas_call(
        fused_style_encoder_kernel,
        out_shape=jax.ShapeDtypeStruct((B, H), jnp.float32),
        grid=(1,),                                               # single block: batch folded in
        in_specs=[_full_spec(emb.shape)] + [_full_spec(w.shape) for w in weights],
        out_specs=_full_spec((B, H)),
        compiler_params=pltpu.CompilerParams(dimension_semantics=("arbitrary",)),
        cost_estimate=cost,
    )(emb, *weights)
    return cls                                                   # == last_hidden_states[:, 0, :]


if __name__ == "__main__":
    key = jax.random.PRNGKey(0)
    k_param, k_ids = jax.random.split(key)
    params = init_params(k_param)
    input_ids = jax.random.randint(k_ids, (B, S), 0, VOCAB, dtype=jnp.int32)

    out = jax.block_until_ready(style_encoder_forward(input_ids, params))
    assert out.shape == (B, H), out.shape
    print("KERNEL_OK")
</pallas_src>

<mosaic_0001>
module attributes {stable_mosaic.version = 11 : i64} {
  func.func @fused_style_encoder_kernel(%arg0: i32, %arg1: memref<16x32xf32, #tpu.memory_space<vmem>>, %arg2: memref<1x32xf32, #tpu.memory_space<vmem>>, %arg3: memref<1x32xf32, #tpu.memory_space<vmem>>, %arg4: memref<2x32x96xbf16, #tpu.memory_space<vmem>>, %arg5: memref<2x1x96xf32, #tpu.memory_space<vmem>>, %arg6: memref<2x32x32xbf16, #tpu.memory_space<vmem>>, %arg7: memref<2x1x32xf32, #tpu.memory_space<vmem>>, %arg8: memref<2x1x32xf32, #tpu.memory_space<vmem>>, %arg9: memref<2x1x32xf32, #tpu.memory_space<vmem>>, %arg10: memref<2x32x64xbf16, #tpu.memory_space<vmem>>, %arg11: memref<2x1x64xf32, #tpu.memory_space<vmem>>, %arg12: memref<2x64x32xbf16, #tpu.memory_space<vmem>>, %arg13: memref<2x1x32xf32, #tpu.memory_space<vmem>>, %arg14: memref<2x1x32xf32, #tpu.memory_space<vmem>>, %arg15: memref<2x1x32xf32, #tpu.memory_space<vmem>>, %arg16: memref<2x32xf32, #tpu.memory_space<vmem>>) attributes {dimension_semantics = [#tpu.dimension_semantics<arbitrary>], iteration_bounds = array<i64: 1>, scalar_prefetch = 0 : i64, scratch_operands = 0 : i64, tpu.core_type = #tpu.core_type<tc>, window_params = [{pipeline_mode = #tpu.pipeline_mode<synchronous>, transform_indices = @transform_0, window_bounds = array<i64: 16, 32>}, {pipeline_mode = #tpu.pipeline_mode<synchronous>, transform_indices = @transform_1, window_bounds = array<i64: 1, 32>}, {pipeline_mode = #tpu.pipeline_mode<synchronous>, transform_indices = @transform_2, window_bounds = array<i64: 1, 32>}, {pipeline_mode = #tpu.pipeline_mode<synchronous>, transform_indices = @transform_3, window_bounds = array<i64: 2, 32, 96>}, {pipeline_mode = #tpu.pipeline_mode<synchronous>, transform_indices = @transform_4, window_bounds = array<i64: 2, 1, 96>}, {pipeline_mode = #tpu.pipeline_mode<synchronous>, transform_indices = @transform_5, window_bounds = array<i64: 2, 32, 32>}, {pipeline_mode = #tpu.pipeline_mode<synchronous>, transform_indices = @transform_6, window_bounds = array<i64: 2, 1, 32>}, {pipeline_mode = #tpu.pipeline_mode<synchronous>, transform_indices = @transform_7, window_bounds = array<i64: 2, 1, 32>}, {pipeline_mode = #tpu.pipeline_mode<synchronous>, transform_indices = @transform_8, window_bounds = array<i64: 2, 1, 32>}, {pipeline_mode = #tpu.pipeline_mode<synchronous>, transform_indices = @transform_9, window_bounds = array<i64: 2, 32, 64>}, {pipeline_mode = #tpu.pipeline_mode<synchronous>, transform_indices = @transform_10, window_bounds = array<i64: 2, 1, 64>}, {pipeline_mode = #tpu.pipeline_mode<synchronous>, transform_indices = @transform_11, window_bounds = array<i64: 2, 64, 32>}, {pipeline_mode = #tpu.pipeline_mode<synchronous>, transform_indices = @transform_12, window_bounds = array<i64: 2, 1, 32>}, {pipeline_mode = #tpu.pipeline_mode<synchronous>, transform_indices = @transform_13, window_bounds = array<i64: 2, 1, 32>}, {pipeline_mode = #tpu.pipeline_mode<synchronous>, transform_indices = @transform_14, window_bounds = array<i64: 2, 1, 32>}, {pipeline_mode = #tpu.pipeline_mode<synchronous>, transform_indices = @transform_15, window_bounds = array<i64: 2, 32>}]} {
    %c0 = arith.constant 0 : index
    %c0_0 = arith.constant 0 : index
    %0 = vector.load %arg1[%c0, %c0_0] : memref<16x32xf32, #tpu.memory_space<vmem>>, vector<16x32xf32>
    %c0_1 = arith.constant 0 : index
    %c0_2 = arith.constant 0 : index
    %1 = vector.load %arg2[%c0_1, %c0_2] : memref<1x32xf32, #tpu.memory_space<vmem>>, vector<1x32xf32>
    %c0_3 = arith.constant 0 : index
    %c0_4 = arith.constant 0 : index
    %2 = vector.load %arg3[%c0_3, %c0_4] : memref<1x32xf32, #tpu.memory_space<vmem>>, vector<1x32xf32>
    %cst = arith.constant dense<0.000000e+00> : vector<16xf32>
    %3 = vector.multi_reduction <add>, %0, %cst [1] : vector<16x32xf32> to vector<16xf32>
    %4 = vector.shape_cast %3 : vector<16xf32> to vector<16x1xf32>
    %cst_5 = arith.constant 3.200000e+01 : f32
    %5 = vector.broadcast %cst_5 : f32 to vector<16x1xf32>
    %6 = arith.divf %4, %5 : vector<16x1xf32>
    %7 = vector.broadcast %6 : vector<16x1xf32> to vector<16x32xf32>
    %8 = arith.subf %0, %7 : vector<16x32xf32>
    %9 = arith.mulf %8, %8 : vector<16x32xf32>
    %cst_6 = arith.constant dense<0.000000e+00> : vector<16xf32>
    %10 = vector.multi_reduction <add>, %9, %cst_6 [1] : vector<16x32xf32> to vector<16xf32>
    %11 = vector.shape_cast %10 : vector<16xf32> to vector<16x1xf32>
    %cst_7 = arith.constant 3.200000e+01 : f32
    %12 = vector.broadcast %cst_7 : f32 to vector<16x1xf32>
    %13 = arith.divf %11, %12 : vector<16x1xf32>
    %14 = vector.broadcast %6 : vector<16x1xf32> to vector<16x32xf32>
    %15 = arith.subf %0, %14 : vector<16x32xf32>
    %cst_8 = arith.constant 9.99999996E-13 : f32
    %16 = vector.broadcast %cst_8 : f32 to vector<16x1xf32>
    %17 = arith.addf %13, %16 : vector<16x1xf32>
    %18 = math.rsqrt %17 : vector<16x1xf32>
    %19 = vector.broadcast %18 : vector<16x1xf32> to vector<16x32xf32>
    %20 = arith.mulf %15, %19 : vector<16x32xf32>
    %21 = vector.broadcast %1 : vector<1x32xf32> to vector<16x32xf32>
    %22 = arith.mulf %20, %21 : vector<16x32xf32>
    %23 = vector.broadcast %2 : vector<1x32xf32> to vector<16x32xf32>
    %24 = arith.addf %22, %23 : vector<16x32xf32>
    %25 = arith.truncf %24 : vector<16x32xf32> to vector<16x32xbf16>
    %c0_9 = arith.constant 0 : index
    %c0_10 = arith.constant 0 : index
    %c0_11 = arith.constant 0 : index
    %26 = vector.load %arg4[%c0_9, %c0_10, %c0_11] : memref<2x32x96xbf16, #tpu.memory_space<vmem>>, vector<1x32x96xbf16>
    %27 = vector.shape_cast %26 : vector<1x32x96xbf16> to vector<32x96xbf16>
    %cst_12 = arith.constant dense<0.000000e+00> : vector<16x96xf32>
    %28 = tpu.matmul %25, %27, %cst_12 {dimension_numbers = #tpu.dot_dimension_numbers<[1], [0], [0], [1], [0, 0, 1, 1], [], []>} : vector<16x32xbf16>, vector<32x96xbf16>, vector<16x96xf32> -> vector<16x96xf32>
    %c0_13 = arith.constant 0 : index
    %c0_14 = arith.constant 0 : index
    %c0_15 = arith.constant 0 : index
    %29 = vector.load %arg5[%c0_13, %c0_14, %c0_15] : memref<2x1x96xf32, #tpu.memory_space<vmem>>, vector<1x1x96xf32>
    %30 = vector.shape_cast %29 : vector<1x1x96xf32> to vector<1x96xf32>
    %31 = vector.broadcast %30 : vector<1x96xf32> to vector<16x96xf32>
    %32 = arith.addf %28, %31 : vector<16x96xf32>
    %33 = vector.extract_strided_slice %32 {offsets = [0, 0], sizes = [16, 8], strides = [1, 1]} : vector<16x96xf32> to vector<16x8xf32>
    %34 = vector.shape_cast %33 : vector<16x8xf32> to vector<2x8x8xf32>
    %35 = vector.extract_strided_slice %32 {offsets = [0, 8], sizes = [16, 8], strides = [1, 1]} : vector<16x96xf32> to vector<16x8xf32>
    %36 = vector.shape_cast %35 : vector<16x8xf32> to vector<2x8x8xf32>
    %37 = vector.extract_strided_slice %32 {offsets = [0, 16], sizes = [16, 8], strides = [1, 1]} : vector<16x96xf32> to vector<16x8xf32>
    %38 = vector.shape_cast %37 : vector<16x8xf32> to vector<2x8x8xf32>
    %39 = vector.extract_strided_slice %32 {offsets = [0, 24], sizes = [16, 8], strides = [1, 1]} : vector<16x96xf32> to vector<16x8xf32>
    %40 = vector.shape_cast %39 : vector<16x8xf32> to vector<2x8x8xf32>
    %41 = tpu.concatenate %34, %36, %38, %40 in 0 : vector<2x8x8xf32>, vector<2x8x8xf32>, vector<2x8x8xf32>, vector<2x8x8xf32> -> vector<8x8x8xf32>
    %42 = vector.extract_strided_slice %32 {offsets = [0, 32], sizes = [16, 8], strides = [1, 1]} : vector<16x96xf32> to vector<16x8xf32>
    %43 = vector.shape_cast %42 : vector<16x8xf32> to vector<2x8x8xf32>
    %44 = vector.extract_strided_slice %32 {offsets = [0, 40], sizes = [16, 8], strides = [1, 1]} : vector<16x96xf32> to vector<16x8xf32>
    %45 = vector.shape_cast %44 : vector<16x8xf32> to vector<2x8x8xf32>
    %46 = vector.extract_strided_slice %32 {offsets = [0, 48], sizes = [16, 8], strides = [1, 1]} : vector<16x96xf32> to vector<16x8xf32>
    %47 = vector.shape_cast %46 : vector<16x8xf32> to vector<2x8x8xf32>
    %48 = vector.extract_strided_slice %32 {offsets = [0, 56], sizes = [16, 8], strides = [1, 1]} : vector<16x96xf32> to vector<16x8xf32>
    %49 = vector.shape_cast %48 : vector<16x8xf32> to vector<2x8x8xf32>
    %50 = tpu.concatenate %43, %45, %47, %49 in 0 : vector<2x8x8xf32>, vector<2x8x8xf32>, vector<2x8x8xf32>, vector<2x8x8xf32> -> vector<8x8x8xf32>
    %51 = vector.extract_strided_slice %32 {offsets = [0, 64], sizes = [16, 8], strides = [1, 1]} : vector<16x96xf32> to vector<16x8xf32>
    %52 = vector.shape_cast %51 : vector<16x8xf32> to vector<2x8x8xf32>
    %53 = vector.extract_strided_slice %32 {offsets = [0, 72], sizes = [16, 8], strides = [1, 1]} : vector<16x96xf32> to vector<16x8xf32>
    %54 = vector.shape_cast %53 : vector<16x8xf32> to vector<2x8x8xf32>
    %55 = vector.extract_strided_slice %32 {offsets = [0, 80], sizes = [16, 8], strides = [1, 1]} : vector<16x96xf32> to vector<16x8xf32>
    %56 = vector.shape_cast %55 : vector<16x8xf32> to vector<2x8x8xf32>
    %57 = vector.extract_strided_slice %32 {offsets = [0, 88], sizes = [16, 8], strides = [1, 1]} : vector<16x96xf32> to vector<16x8xf32>
    %58 = vector.shape_cast %57 : vector<16x8xf32> to vector<2x8x8xf32>
    %59 = tpu.concatenate %52, %54, %56, %58 in 0 : vector<2x8x8xf32>, vector<2x8x8xf32>, vector<2x8x8xf32>, vector<2x8x8xf32> -> vector<8x8x8xf32>
    "tpu.trace_start"() <{level = 10 : i32, message = "zqd,zkd->zqk"}> : () -> ()
    %cst_16 = arith.constant dense<0.000000e+00> : vector<8x8x8xf32>
    %60 = tpu.matmul %41, %50, %cst_16 {dimension_numbers = #tpu.dot_dimension_numbers<[2], [2], [1], [1], [0, 0, 0, 1, 1, 1], [0], [0]>} : vector<8x8x8xf32>, vector<8x8x8xf32>, vector<8x8x8xf32> -> vector<8x8x8xf32>
    "tpu.trace_stop"() : () -> ()
    %cst_17 = arith.constant 0.353553385 : f32
    %61 = vector.broadcast %cst_17 : f32 to vector<8x8x8xf32>
    %62 = arith.mulf %60, %61 : vector<8x8x8xf32>
    %cst_18 = arith.constant dense<0xFF800000> : vector<8x8xf32>
    %63 = vector.multi_reduction <maximumf>, %62, %cst_18 [2] : vector<8x8x8xf32> to vector<8x8xf32>
    %64 = vector.shape_cast %63 : vector<8x8xf32> to vector<8x8x1xf32>
    %65 = vector.broadcast %64 : vector<8x8x1xf32> to vector<8x8x8xf32>
    %66 = arith.subf %62, %65 : vector<8x8x8xf32>
    %67 = math.exp %66 : vector<8x8x8xf32>
    %cst_19 = arith.constant dense<0.000000e+00> : vector<8x8xf32>
    %68 = vector.multi_reduction <add>, %67, %cst_19 [2] : vector<8x8x8xf32> to vector<8x8xf32>
    %69 = vector.shape_cast %68 : vector<8x8xf32> to vector<8x8x1xf32>
    %70 = tpu.reciprocal %69 {approx = true} : vector<8x8x1xf32> -> vector<8x8x1xf32>
    %71 = vector.broadcast %70 : vector<8x8x1xf32> to vector<8x8x8xf32>
    %72 = arith.mulf %67, %71 : vector<8x8x8xf32>
    "tpu.trace_start"() <{level = 10 : i32, message = "zqk,zkd->zqd"}> : () -> ()
    %cst_20 = arith.constant dense<0.000000e+00> : vector<8x8x8xf32>
    %73 = tpu.matmul %72, %59, %cst_20 {dimension_numbers = #tpu.dot_dimension_numbers<[2], [1], [1], [2], [0, 0, 0, 1, 1, 2], [0], [0]>} : vector<8x8x8xf32>, vector<8x8x8xf32>, vector<8x8x8xf32> -> vector<8x8x8xf32>
    "tpu.trace_stop"() : () -> ()
    %74 = vector.extract_strided_slice %73 {offsets = [0, 0, 0], sizes = [2, 8, 8], strides = [1, 1, 1]} : vector<8x8x8xf32> to vector<2x8x8xf32>
    %75 = vector.shape_cast %74 : vector<2x8x8xf32> to vector<16x8xf32>
    %76 = vector.extract_strided_slice %73 {offsets = [2, 0, 0], sizes = [2, 8, 8], strides = [1, 1, 1]} : vector<8x8x8xf32> to vector<2x8x8xf32>
    %77 = vector.shape_cast %76 : vector<2x8x8xf32> to vector<16x8xf32>
    %78 = vector.extract_strided_slice %73 {offsets = [4, 0, 0], sizes = [2, 8, 8], strides = [1, 1, 1]} : vector<8x8x8xf32> to vector<2x8x8xf32>
    %79 = vector.shape_cast %78 : vector<2x8x8xf32> to vector<16x8xf32>
    %80 = vector.extract_strided_slice %73 {offsets = [6, 0, 0], sizes = [2, 8, 8], strides = [1, 1, 1]} : vector<8x8x8xf32> to vector<2x8x8xf32>
    %81 = vector.shape_cast %80 : vector<2x8x8xf32> to vector<16x8xf32>
    %82 = tpu.concatenate %75, %77, %79, %81 in 1 : vector<16x8xf32>, vector<16x8xf32>, vector<16x8xf32>, vector<16x8xf32> -> vector<16x32xf32>
    %83 = arith.truncf %82 : vector<16x32xf32> to vector<16x32xbf16>
    %c0_21 = arith.constant 0 : index
    %c0_22 = arith.constant 0 : index
    %c0_23 = arith.constant 0 : index
    %84 = vector.load %arg6[%c0_21, %c0_22, %c0_23] : memref<2x32x32xbf16, #tpu.memory_space<vmem>>, vector<1x32x32xbf16>
    %85 = vector.shape_cast %84 : vector<1x32x32xbf16> to vector<32x32xbf16>
    %cst_24 = arith.constant dense<0.000000e+00> : vector<16x32xf32>
    %86 = tpu.matmul %83, %85, %cst_24 {dimension_numbers = #tpu.dot_dimension_numbers<[1], [0], [0], [1], [0, 0, 1, 1], [], []>} : vector<16x32xbf16>, vector<32x32xbf16>, vector<16x32xf32> -> vector<16x32xf32>
    %c0_25 = arith.constant 0 : index
    %c0_26 = arith.constant 0 : index
    %c0_27 = arith.constant 0 : index
    %87 = vector.load %arg7[%c0_25, %c0_26, %c0_27] : memref<2x1x32xf32, #tpu.memory_space<vmem>>, vector<1x1x32xf32>
    %88 = vector.shape_cast %87 : vector<1x1x32xf32> to vector<1x32xf32>
    %89 = vector.broadcast %88 : vector<1x32xf32> to vector<16x32xf32>
    %90 = arith.addf %86, %89 : vector<16x32xf32>
    %91 = arith.addf %24, %90 : vector<16x32xf32>
    %c0_28 = arith.constant 0 : index
    %c0_29 = arith.constant 0 : index
    %c0_30 = arith.constant 0 : index
    %92 = vector.load %arg8[%c0_28, %c0_29, %c0_30] : memref<2x1x32xf32, #tpu.memory_space<vmem>>, vector<1x1x32xf32>
    %93 = vector.shape_cast %92 : vector<1x1x32xf32> to vector<1x32xf32>
    %c0_31 = arith.constant 0 : index
    %c0_32 = arith.constant 0 : index
    %c0_33 = arith.constant 0 : index
    %94 = vector.load %arg9[%c0_31, %c0_32, %c0_33] : memref<2x1x32xf32, #tpu.memory_space<vmem>>, vector<1x1x32xf32>
    %95 = vector.shape_cast %94 : vector<1x1x32xf32> to vector<1x32xf32>
    %cst_34 = arith.constant dense<0.000000e+00> : vector<16xf32>
    %96 = vector.multi_reduction <add>, %91, %cst_34 [1] : vector<16x32xf32> to vector<16xf32>
    %97 = vector.shape_cast %96 : vector<16xf32> to vector<16x1xf32>
    %cst_35 = arith.constant 3.200000e+01 : f32
    %98 = vector.broadcast %cst_35 : f32 to vector<16x1xf32>
    %99 = arith.divf %97, %98 : vector<16x1xf32>
    %100 = vector.broadcast %99 : vector<16x1xf32> to vector<16x32xf32>
    %101 = arith.subf %91, %100 : vector<16x32xf32>
    %102 = arith.mulf %101, %101 : vector<16x32xf32>
    %cst_36 = arith.constant dense<0.000000e+00> : vector<16xf32>
    %103 = vector.multi_reduction <add>, %102, %cst_36 [1] : vector<16x32xf32> to vector<16xf32>
    %104 = vector.shape_cast %103 : vector<16xf32> to vector<16x1xf32>
    %cst_37 = arith.constant 3.200000e+01 : f32
    %105 = vector.broadcast %cst_37 : f32 to vector<16x1xf32>
    %106 = arith.divf %104, %105 : vector<16x1xf32>
    %107 = vector.broadcast %99 : vector<16x1xf32> to vector<16x32xf32>
    %108 = arith.subf %91, %107 : vector<16x32xf32>
    %cst_38 = arith.constant 9.99999996E-13 : f32
    %109 = vector.broadcast %cst_38 : f32 to vector<16x1xf32>
    %110 = arith.addf %106, %109 : vector<16x1xf32>
    %111 = math.rsqrt %110 : vector<16x1xf32>
    %112 = vector.broadcast %111 : vector<16x1xf32> to vector<16x32xf32>
    %113 = arith.mulf %108, %112 : vector<16x32xf32>
    %114 = vector.broadcast %93 : vector<1x32xf32> to vector<16x32xf32>
    %115 = arith.mulf %113, %114 : vector<16x32xf32>
    %116 = vector.broadcast %95 : vector<1x32xf32> to vector<16x32xf32>
    %117 = arith.addf %115, %116 : vector<16x32xf32>
    %118 = arith.truncf %117 : vector<16x32xf32> to vector<16x32xbf16>
    %c0_39 = arith.constant 0 : index
    %c0_40 = arith.constant 0 : index
    %c0_41 = arith.constant 0 : index
    %119 = vector.load %arg10[%c0_39, %c0_40, %c0_41] : memref<2x32x64xbf16, #tpu.memory_space<vmem>>, vector<1x32x64xbf16>
    %120 = vector.shape_cast %119 : vector<1x32x64xbf16> to vector<32x64xbf16>
    %cst_42 = arith.constant dense<0.000000e+00> : vector<16x64xf32>
    %121 = tpu.matmul %118, %120, %cst_42 {dimension_numbers = #tpu.dot_dimension_numbers<[1], [0], [0], [1], [0, 0, 1, 1], [], []>} : vector<16x32xbf16>, vector<32x64xbf16>, vector<16x64xf32> -> vector<16x64xf32>
    %c0_43 = arith.constant 0 : index
    %c0_44 = arith.constant 0 : index
    %c0_45 = arith.constant 0 : index
    %122 = vector.load %arg11[%c0_43, %c0_44, %c0_45] : memref<2x1x64xf32, #tpu.memory_space<vmem>>, vector<1x1x64xf32>
    %123 = vector.shape_cast %122 : vector<1x1x64xf32> to vector<1x64xf32>
    %124 = vector.broadcast %123 : vector<1x64xf32> to vector<16x64xf32>
    %125 = arith.addf %121, %124 : vector<16x64xf32>
    %126 = arith.mulf %125, %125 : vector<16x64xf32>
    %127 = arith.mulf %125, %126 : vector<16x64xf32>
    %cst_46 = arith.constant 4.471500e-02 : f32
    %128 = vector.broadcast %cst_46 : f32 to vector<16x64xf32>
    %129 = arith.mulf %128, %127 : vector<16x64xf32>
    %130 = arith.addf %125, %129 : vector<16x64xf32>
    %cst_47 = arith.constant 0.797884583 : f32
    %131 = vector.broadcast %cst_47 : f32 to vector<16x64xf32>
    %132 = arith.mulf %131, %130 : vector<16x64xf32>
    %133 = math.tanh %132 : vector<16x64xf32>
    %cst_48 = arith.constant 1.000000e+00 : f32
    %134 = vector.broadcast %cst_48 : f32 to vector<16x64xf32>
    %135 = arith.addf %134, %133 : vector<16x64xf32>
    %cst_49 = arith.constant 5.000000e-01 : f32
    %136 = vector.broadcast %cst_49 : f32 to vector<16x64xf32>
    %137 = arith.mulf %136, %135 : vector<16x64xf32>
    %138 = arith.mulf %125, %137 : vector<16x64xf32>
    %139 = arith.truncf %138 : vector<16x64xf32> to vector<16x64xbf16>
    %c0_50 = arith.constant 0 : index
    %c0_51 = arith.constant 0 : index
    %c0_52 = arith.constant 0 : index
    %140 = vector.load %arg12[%c0_50, %c0_51, %c0_52] : memref<2x64x32xbf16, #tpu.memory_space<vmem>>, vector<1x64x32xbf16>
    %141 = vector.shape_cast %140 : vector<1x64x32xbf16> to vector<64x32xbf16>
    %cst_53 = arith.constant dense<0.000000e+00> : vector<16x32xf32>
    %142 = tpu.matmul %139, %141, %cst_53 {dimension_numbers = #tpu.dot_dimension_numbers<[1], [0], [0], [1], [0, 0, 1, 1], [], []>} : vector<16x64xbf16>, vector<64x32xbf16>, vector<16x32xf32> -> vector<16x32xf32>
    %c0_54 = arith.constant 0 : index
    %c0_55 = arith.constant 0 : index
    %c0_56 = arith.constant 0 : index
    %143 = vector.load %arg13[%c0_54, %c0_55, %c0_56] : memref<2x1x32xf32, #tpu.memory_space<vmem>>, vector<1x1x32xf32>
    %144 = vector.shape_cast %143 : vector<1x1x32xf32> to vector<1x32xf32>
    %145 = vector.broadcast %144 : vector<1x32xf32> to vector<16x32xf32>
    %146 = arith.addf %142, %145 : vector<16x32xf32>
    %147 = arith.addf %117, %146 : vector<16x32xf32>
    %c0_57 = arith.constant 0 : index
    %c0_58 = arith.constant 0 : index
    %c0_59 = arith.constant 0 : index
    %148 = vector.load %arg14[%c0_57, %c0_58, %c0_59] : memref<2x1x32xf32, #tpu.memory_space<vmem>>, vector<1x1x32xf32>
    %149 = vector.shape_cast %148 : vector<1x1x32xf32> to vector<1x32xf32>
    %c0_60 = arith.constant 0 : index
    %c0_61 = arith.constant 0 : index
    %c0_62 = arith.constant 0 : index
    %150 = vector.load %arg15[%c0_60, %c0_61, %c0_62] : memref<2x1x32xf32, #tpu.memory_space<vmem>>, vector<1x1x32xf32>
    %151 = vector.shape_cast %150 : vector<1x1x32xf32> to vector<1x32xf32>
    %cst_63 = arith.constant dense<0.000000e+00> : vector<16xf32>
    %152 = vector.multi_reduction <add>, %147, %cst_63 [1] : vector<16x32xf32> to vector<16xf32>
    %153 = vector.shape_cast %152 : vector<16xf32> to vector<16x1xf32>
    %cst_64 = arith.constant 3.200000e+01 : f32
    %154 = vector.broadcast %cst_64 : f32 to vector<16x1xf32>
    %155 = arith.divf %153, %154 : vector<16x1xf32>
    %156 = vector.broadcast %155 : vector<16x1xf32> to vector<16x32xf32>
    %157 = arith.subf %147, %156 : vector<16x32xf32>
    %158 = arith.mulf %157, %157 : vector<16x32xf32>
    %cst_65 = arith.constant dense<0.000000e+00> : vector<16xf32>
    %159 = vector.multi_reduction <add>, %158, %cst_65 [1] : vector<16x32xf32> to vector<16xf32>
    %160 = vector.shape_cast %159 : vector<16xf32> to vector<16x1xf32>
    %cst_66 = arith.constant 3.200000e+01 : f32
    %161 = vector.broadcast %cst_66 : f32 to vector<16x1xf32>
    %162 = arith.divf %160, %161 : vector<16x1xf32>
    %163 = vector.broadcast %155 : vector<16x1xf32> to vector<16x32xf32>
    %164 = arith.subf %147, %163 : vector<16x32xf32>
    %cst_67 = arith.constant 9.99999996E-13 : f32
    %165 = vector.broadcast %cst_67 : f32 to vector<16x1xf32>
    %166 = arith.addf %162, %165 : vector<16x1xf32>
    %167 = math.rsqrt %166 : vector<16x1xf32>
    %168 = vector.broadcast %167 : vector<16x1xf32> to vector<16x32xf32>
    %169 = arith.mulf %164, %168 : vector<16x32xf32>
    %170 = vector.broadcast %149 : vector<1x32xf32> to vector<16x32xf32>
    %171 = arith.mulf %169, %170 : vector<16x32xf32>
    %172 = vector.broadcast %151 : vector<1x32xf32> to vector<16x32xf32>
    %173 = arith.addf %171, %172 : vector<16x32xf32>
    %174 = arith.truncf %173 : vector<16x32xf32> to vector<16x32xbf16>
    %c1 = arith.constant 1 : index
    %c0_68 = arith.constant 0 : index
    %c0_69 = arith.constant 0 : index
    %175 = vector.load %arg4[%c1, %c0_68, %c0_69] : memref<2x32x96xbf16, #tpu.memory_space<vmem>>, vector<1x32x96xbf16>
    %176 = vector.shape_cast %175 : vector<1x32x96xbf16> to vector<32x96xbf16>
    %cst_70 = arith.constant dense<0.000000e+00> : vector<16x96xf32>
    %177 = tpu.matmul %174, %176, %cst_70 {dimension_numbers = #tpu.dot_dimension_numbers<[1], [0], [0], [1], [0, 0, 1, 1], [], []>} : vector<16x32xbf16>, vector<32x96xbf16>, vector<16x96xf32> -> vector<16x96xf32>
    %c1_71 = arith.constant 1 : index
    %c0_72 = arith.constant 0 : index
    %c0_73 = arith.constant 0 : index
    %178 = vector.load %arg5[%c1_71, %c0_72, %c0_73] : memref<2x1x96xf32, #tpu.memory_space<vmem>>, vector<1x1x96xf32>
    %179 = vector.shape_cast %178 : vector<1x1x96xf32> to vector<1x96xf32>
    %180 = vector.broadcast %179 : vector<1x96xf32> to vector<16x96xf32>
    %181 = arith.addf %177, %180 : vector<16x96xf32>
    %182 = vector.extract_strided_slice %181 {offsets = [0, 0], sizes = [16, 8], strides = [1, 1]} : vector<16x96xf32> to vector<16x8xf32>
    %183 = vector.shape_cast %182 : vector<16x8xf32> to vector<2x8x8xf32>
    %184 = vector.extract_strided_slice %181 {offsets = [0, 8], sizes = [16, 8], strides = [1, 1]} : vector<16x96xf32> to vector<16x8xf32>
    %185 = vector.shape_cast %184 : vector<16x8xf32> to vector<2x8x8xf32>
    %186 = vector.extract_strided_slice %181 {offsets = [0, 16], sizes = [16, 8], strides = [1, 1]} : vector<16x96xf32> to vector<16x8xf32>
    %187 = vector.shape_cast %186 : vector<16x8xf32> to vector<2x8x8xf32>
    %188 = vector.extract_strided_slice %181 {offsets = [0, 24], sizes = [16, 8], strides = [1, 1]} : vector<16x96xf32> to vector<16x8xf32>
    %189 = vector.shape_cast %188 : vector<16x8xf32> to vector<2x8x8xf32>
    %190 = tpu.concatenate %183, %185, %187, %189 in 0 : vector<2x8x8xf32>, vector<2x8x8xf32>, vector<2x8x8xf32>, vector<2x8x8xf32> -> vector<8x8x8xf32>
    %191 = vector.extract_strided_slice %181 {offsets = [0, 32], sizes = [16, 8], strides = [1, 1]} : vector<16x96xf32> to vector<16x8xf32>
    %192 = vector.shape_cast %191 : vector<16x8xf32> to vector<2x8x8xf32>
    %193 = vector.extract_strided_slice %181 {offsets = [0, 40], sizes = [16, 8], strides = [1, 1]} : vector<16x96xf32> to vector<16x8xf32>
    %194 = vector.shape_cast %193 : vector<16x8xf32> to vector<2x8x8xf32>
    %195 = vector.extract_strided_slice %181 {offsets = [0, 48], sizes = [16, 8], strides = [1, 1]} : vector<16x96xf32> to vector<16x8xf32>
    %196 = vector.shape_cast %195 : vector<16x8xf32> to vector<2x8x8xf32>
    %197 = vector.extract_strided_slice %181 {offsets = [0, 56], sizes = [16, 8], strides = [1, 1]} : vector<16x96xf32> to vector<16x8xf32>
    %198 = vector.shape_cast %197 : vector<16x8xf32> to vector<2x8x8xf32>
    %199 = tpu.concatenate %192, %194, %196, %198 in 0 : vector<2x8x8xf32>, vector<2x8x8xf32>, vector<2x8x8xf32>, vector<2x8x8xf32> -> vector<8x8x8xf32>
    %200 = vector.extract_strided_slice %181 {offsets = [0, 64], sizes = [16, 8], strides = [1, 1]} : vector<16x96xf32> to vector<16x8xf32>
    %201 = vector.shape_cast %200 : vector<16x8xf32> to vector<2x8x8xf32>
    %202 = vector.extract_strided_slice %181 {offsets = [0, 72], sizes = [16, 8], strides = [1, 1]} : vector<16x96xf32> to vector<16x8xf32>
    %203 = vector.shape_cast %202 : vector<16x8xf32> to vector<2x8x8xf32>
    %204 = vector.extract_strided_slice %181 {offsets = [0, 80], sizes = [16, 8], strides = [1, 1]} : vector<16x96xf32> to vector<16x8xf32>
    %205 = vector.shape_cast %204 : vector<16x8xf32> to vector<2x8x8xf32>
    %206 = vector.extract_strided_slice %181 {offsets = [0, 88], sizes = [16, 8], strides = [1, 1]} : vector<16x96xf32> to vector<16x8xf32>
    %207 = vector.shape_cast %206 : vector<16x8xf32> to vector<2x8x8xf32>
    %208 = tpu.concatenate %201, %203, %205, %207 in 0 : vector<2x8x8xf32>, vector<2x8x8xf32>, vector<2x8x8xf32>, vector<2x8x8xf32> -> vector<8x8x8xf32>
    "tpu.trace_start"() <{level = 10 : i32, message = "zqd,zkd->zqk"}> : () -> ()
    %cst_74 = arith.constant dense<0.000000e+00> : vector<8x8x8xf32>
    %209 = tpu.matmul %190, %199, %cst_74 {dimension_numbers = #tpu.dot_dimension_numbers<[2], [2], [1], [1], [0, 0, 0, 1, 1, 1], [0], [0]>} : vector<8x8x8xf32>, vector<8x8x8xf32>, vector<8x8x8xf32> -> vector<8x8x8xf32>
    "tpu.trace_stop"() : () -> ()
    %cst_75 = arith.constant 0.353553385 : f32
    %210 = vector.broadcast %cst_75 : f32 to vector<8x8x8xf32>
    %211 = arith.mulf %209, %210 : vector<8x8x8xf32>
    %cst_76 = arith.constant dense<0xFF800000> : vector<8x8xf32>
    %212 = vector.multi_reduction <maximumf>, %211, %cst_76 [2] : vector<8x8x8xf32> to vector<8x8xf32>
    %213 = vector.shape_cast %212 : vector<8x8xf32> to vector<8x8x1xf32>
    %214 = vector.broadcast %213 : vector<8x8x1xf32> to vector<8x8x8xf32>
    %215 = arith.subf %211, %214 : vector<8x8x8xf32>
    %216 = math.exp %215 : vector<8x8x8xf32>
    %cst_77 = arith.constant dense<0.000000e+00> : vector<8x8xf32>
    %217 = vector.multi_reduction <add>, %216, %cst_77 [2] : vector<8x8x8xf32> to vector<8x8xf32>
    %218 = vector.shape_cast %217 : vector<8x8xf32> to vector<8x8x1xf32>
    %219 = tpu.reciprocal %218 {approx = true} : vector<8x8x1xf32> -> vector<8x8x1xf32>
    %220 = vector.broadcast %219 : vector<8x8x1xf32> to vector<8x8x8xf32>
    %221 = arith.mulf %216, %220 : vector<8x8x8xf32>
    "tpu.trace_start"() <{level = 10 : i32, message = "zqk,zkd->zqd"}> : () -> ()
    %cst_78 = arith.constant dense<0.000000e+00> : vector<8x8x8xf32>
    %222 = tpu.matmul %221, %208, %cst_78 {dimension_numbers = #tpu.dot_dimension_numbers<[2], [1], [1], [2], [0, 0, 0, 1, 1, 2], [0], [0]>} : vector<8x8x8xf32>, vector<8x8x8xf32>, vector<8x8x8xf32> -> vector<8x8x8xf32>
    "tpu.trace_stop"() : () -> ()
    %223 = vector.extract_strided_slice %222 {offsets = [0, 0, 0], sizes = [2, 8, 8], strides = [1, 1, 1]} : vector<8x8x8xf32> to vector<2x8x8xf32>
    %224 = vector.shape_cast %223 : vector<2x8x8xf32> to vector<16x8xf32>
    %225 = vector.extract_strided_slice %222 {offsets = [2, 0, 0], sizes = [2, 8, 8], strides = [1, 1, 1]} : vector<8x8x8xf32> to vector<2x8x8xf32>
    %226 = vector.shape_cast %225 : vector<2x8x8xf32> to vector<16x8xf32>
    %227 = vector.extract_strided_slice %222 {offsets = [4, 0, 0], sizes = [2, 8, 8], strides = [1, 1, 1]} : vector<8x8x8xf32> to vector<2x8x8xf32>
    %228 = vector.shape_cast %227 : vector<2x8x8xf32> to vector<16x8xf32>
    %229 = vector.extract_strided_slice %222 {offsets = [6, 0, 0], sizes = [2, 8, 8], strides = [1, 1, 1]} : vector<8x8x8xf32> to vector<2x8x8xf32>
    %230 = vector.shape_cast %229 : vector<2x8x8xf32> to vector<16x8xf32>
    %231 = tpu.concatenate %224, %226, %228, %230 in 1 : vector<16x8xf32>, vector<16x8xf32>, vector<16x8xf32>, vector<16x8xf32> -> vector<16x32xf32>
    %232 = arith.truncf %231 : vector<16x32xf32> to vector<16x32xbf16>
    %c1_79 = arith.constant 1 : index
    %c0_80 = arith.constant 0 : index
    %c0_81 = arith.constant 0 : index
    %233 = vector.load %arg6[%c1_79, %c0_80, %c0_81] : memref<2x32x32xbf16, #tpu.memory_space<vmem>>, vector<1x32x32xbf16>
    %234 = vector.shape_cast %233 : vector<1x32x32xbf16> to vector<32x32xbf16>
    %cst_82 = arith.constant dense<0.000000e+00> : vector<16x32xf32>
    %235 = tpu.matmul %232, %234, %cst_82 {dimension_numbers = #tpu.dot_dimension_numbers<[1], [0], [0], [1], [0, 0, 1, 1], [], []>} : vector<16x32xbf16>, vector<32x32xbf16>, vector<16x32xf32> -> vector<16x32xf32>
    %c1_83 = arith.constant 1 : index
    %c0_84 = arith.constant 0 : index
    %c0_85 = arith.constant 0 : index
    %236 = vector.load %arg7[%c1_83, %c0_84, %c0_85] : memref<2x1x32xf32, #tpu.memory_space<vmem>>, vector<1x1x32xf32>
    %237 = vector.shape_cast %236 : vector<1x1x32xf32> to vector<1x32xf32>
    %238 = vector.broadcast %237 : vector<1x32xf32> to vector<16x32xf32>
    %239 = arith.addf %235, %238 : vector<16x32xf32>
    %240 = arith.addf %173, %239 : vector<16x32xf32>
    %c1_86 = arith.constant 1 : index
    %c0_87 = arith.constant 0 : index
    %c0_88 = arith.constant 0 : index
    %241 = vector.load %arg8[%c1_86, %c0_87, %c0_88] : memref<2x1x32xf32, #tpu.memory_space<vmem>>, vector<1x1x32xf32>
    %242 = vector.shape_cast %241 : vector<1x1x32xf32> to vector<1x32xf32>
    %c1_89 = arith.constant 1 : index
    %c0_90 = arith.constant 0 : index
    %c0_91 = arith.constant 0 : index
    %243 = vector.load %arg9[%c1_89, %c0_90, %c0_91] : memref<2x1x32xf32, #tpu.memory_space<vmem>>, vector<1x1x32xf32>
    %244 = vector.shape_cast %243 : vector<1x1x32xf32> to vector<1x32xf32>
    %cst_92 = arith.constant dense<0.000000e+00> : vector<16xf32>
    %245 = vector.multi_reduction <add>, %240, %cst_92 [1] : vector<16x32xf32> to vector<16xf32>
    %246 = vector.shape_cast %245 : vector<16xf32> to vector<16x1xf32>
    %cst_93 = arith.constant 3.200000e+01 : f32
    %247 = vector.broadcast %cst_93 : f32 to vector<16x1xf32>
    %248 = arith.divf %246, %247 : vector<16x1xf32>
    %249 = vector.broadcast %248 : vector<16x1xf32> to vector<16x32xf32>
    %250 = arith.subf %240, %249 : vector<16x32xf32>
    %251 = arith.mulf %250, %250 : vector<16x32xf32>
    %cst_94 = arith.constant dense<0.000000e+00> : vector<16xf32>
    %252 = vector.multi_reduction <add>, %251, %cst_94 [1] : vector<16x32xf32> to vector<16xf32>
    %253 = vector.shape_cast %252 : vector<16xf32> to vector<16x1xf32>
    %cst_95 = arith.constant 3.200000e+01 : f32
    %254 = vector.broadcast %cst_95 : f32 to vector<16x1xf32>
    %255 = arith.divf %253, %254 : vector<16x1xf32>
    %256 = vector.broadcast %248 : vector<16x1xf32> to vector<16x32xf32>
    %257 = arith.subf %240, %256 : vector<16x32xf32>
    %cst_96 = arith.constant 9.99999996E-13 : f32
    %258 = vector.broadcast %cst_96 : f32 to vector<16x1xf32>
    %259 = arith.addf %255, %258 : vector<16x1xf32>
    %260 = math.rsqrt %259 : vector<16x1xf32>
    %261 = vector.broadcast %260 : vector<16x1xf32> to vector<16x32xf32>
    %262 = arith.mulf %257, %261 : vector<16x32xf32>
    %263 = vector.broadcast %242 : vector<1x32xf32> to vector<16x32xf32>
    %264 = arith.mulf %262, %263 : vector<16x32xf32>
    %265 = vector.broadcast %244 : vector<1x32xf32> to vector<16x32xf32>
    %266 = arith.addf %264, %265 : vector<16x32xf32>
    %267 = arith.truncf %266 : vector<16x32xf32> to vector<16x32xbf16>
    %c1_97 = arith.constant 1 : index
    %c0_98 = arith.constant 0 : index
    %c0_99 = arith.constant 0 : index
    %268 = vector.load %arg10[%c1_97, %c0_98, %c0_99] : memref<2x32x64xbf16, #tpu.memory_space<vmem>>, vector<1x32x64xbf16>
    %269 = vector.shape_cast %268 : vector<1x32x64xbf16> to vector<32x64xbf16>
    %cst_100 = arith.constant dense<0.000000e+00> : vector<16x64xf32>
    %270 = tpu.matmul %267, %269, %cst_100 {dimension_numbers = #tpu.dot_dimension_numbers<[1], [0], [0], [1], [0, 0, 1, 1], [], []>} : vector<16x32xbf16>, vector<32x64xbf16>, vector<16x64xf32> -> vector<16x64xf32>
    %c1_101 = arith.constant 1 : index
    %c0_102 = arith.constant 0 : index
    %c0_103 = arith.constant 0 : index
    %271 = vector.load %arg11[%c1_101, %c0_102, %c0_103] : memref<2x1x64xf32, #tpu.memory_space<vmem>>, vector<1x1x64xf32>
    %272 = vector.shape_cast %271 : vector<1x1x64xf32> to vector<1x64xf32>
    %273 = vector.broadcast %272 : vector<1x64xf32> to vector<16x64xf32>
    %274 = arith.addf %270, %273 : vector<16x64xf32>
    %275 = arith.mulf %274, %274 : vector<16x64xf32>
    %276 = arith.mulf %274, %275 : vector<16x64xf32>
    %cst_104 = arith.constant 4.471500e-02 : f32
    %277 = vector.broadcast %cst_104 : f32 to vector<16x64xf32>
    %278 = arith.mulf %277, %276 : vector<16x64xf32>
    %279 = arith.addf %274, %278 : vector<16x64xf32>
    %cst_105 = arith.constant 0.797884583 : f32
    %280 = vector.broadcast %cst_105 : f32 to vector<16x64xf32>
    %281 = arith.mulf %280, %279 : vector<16x64xf32>
    %282 = math.tanh %281 : vector<16x64xf32>
    %cst_106 = arith.constant 1.000000e+00 : f32
    %283 = vector.broadcast %cst_106 : f32 to vector<16x64xf32>
    %284 = arith.addf %283, %282 : vector<16x64xf32>
    %cst_107 = arith.constant 5.000000e-01 : f32
    %285 = vector.broadcast %cst_107 : f32 to vector<16x64xf32>
    %286 = arith.mulf %285, %284 : vector<16x64xf32>
    %287 = arith.mulf %274, %286 : vector<16x64xf32>
    %288 = arith.truncf %287 : vector<16x64xf32> to vector<16x64xbf16>
    %c1_108 = arith.constant 1 : index
    %c0_109 = arith.constant 0 : index
    %c0_110 = arith.constant 0 : index
    %289 = vector.load %arg12[%c1_108, %c0_109, %c0_110] : memref<2x64x32xbf16, #tpu.memory_space<vmem>>, vector<1x64x32xbf16>
    %290 = vector.shape_cast %289 : vector<1x64x32xbf16> to vector<64x32xbf16>
    %cst_111 = arith.constant dense<0.000000e+00> : vector<16x32xf32>
    %291 = tpu.matmul %288, %290, %cst_111 {dimension_numbers = #tpu.dot_dimension_numbers<[1], [0], [0], [1], [0, 0, 1, 1], [], []>} : vector<16x64xbf16>, vector<64x32xbf16>, vector<16x32xf32> -> vector<16x32xf32>
    %c1_112 = arith.constant 1 : index
    %c0_113 = arith.constant 0 : index
    %c0_114 = arith.constant 0 : index
    %292 = vector.load %arg13[%c1_112, %c0_113, %c0_114] : memref<2x1x32xf32, #tpu.memory_space<vmem>>, vector<1x1x32xf32>
    %293 = vector.shape_cast %292 : vector<1x1x32xf32> to vector<1x32xf32>
    %294 = vector.broadcast %293 : vector<1x32xf32> to vector<16x32xf32>
    %295 = arith.addf %291, %294 : vector<16x32xf32>
    %296 = arith.addf %266, %295 : vector<16x32xf32>
    %c1_115 = arith.constant 1 : index
    %c0_116 = arith.constant 0 : index
    %c0_117 = arith.constant 0 : index
    %297 = vector.load %arg14[%c1_115, %c0_116, %c0_117] : memref<2x1x32xf32, #tpu.memory_space<vmem>>, vector<1x1x32xf32>
    %298 = vector.shape_cast %297 : vector<1x1x32xf32> to vector<1x32xf32>
    %c1_118 = arith.constant 1 : index
    %c0_119 = arith.constant 0 : index
    %c0_120 = arith.constant 0 : index
    %299 = vector.load %arg15[%c1_118, %c0_119, %c0_120] : memref<2x1x32xf32, #tpu.memory_space<vmem>>, vector<1x1x32xf32>
    %300 = vector.shape_cast %299 : vector<1x1x32xf32> to vector<1x32xf32>
    %cst_121 = arith.constant dense<0.000000e+00> : vector<16xf32>
    %301 = vector.multi_reduction <add>, %296, %cst_121 [1] : vector<16x32xf32> to vector<16xf32>
    %302 = vector.shape_cast %301 : vector<16xf32> to vector<16x1xf32>
    %cst_122 = arith.constant 3.200000e+01 : f32
    %303 = vector.broadcast %cst_122 : f32 to vector<16x1xf32>
    %304 = arith.divf %302, %303 : vector<16x1xf32>
    %305 = vector.broadcast %304 : vector<16x1xf32> to vector<16x32xf32>
    %306 = arith.subf %296, %305 : vector<16x32xf32>
    %307 = arith.mulf %306, %306 : vector<16x32xf32>
    %cst_123 = arith.constant dense<0.000000e+00> : vector<16xf32>
    %308 = vector.multi_reduction <add>, %307, %cst_123 [1] : vector<16x32xf32> to vector<16xf32>
    %309 = vector.shape_cast %308 : vector<16xf32> to vector<16x1xf32>
    %cst_124 = arith.constant 3.200000e+01 : f32
    %310 = vector.broadcast %cst_124 : f32 to vector<16x1xf32>
    %311 = arith.divf %309, %310 : vector<16x1xf32>
    %312 = vector.broadcast %304 : vector<16x1xf32> to vector<16x32xf32>
    %313 = arith.subf %296, %312 : vector<16x32xf32>
    %cst_125 = arith.constant 9.99999996E-13 : f32
    %314 = vector.broadcast %cst_125 : f32 to vector<16x1xf32>
    %315 = arith.addf %311, %314 : vector<16x1xf32>
    %316 = math.rsqrt %315 : vector<16x1xf32>
    %317 = vector.broadcast %316 : vector<16x1xf32> to vector<16x32xf32>
    %318 = arith.mulf %313, %317 : vector<16x32xf32>
    %319 = vector.broadcast %298 : vector<1x32xf32> to vector<16x32xf32>
    %320 = arith.mulf %318, %319 : vector<16x32xf32>
    %321 = vector.broadcast %300 : vector<1x32xf32> to vector<16x32xf32>
    %322 = arith.addf %320, %321 : vector<16x32xf32>
    %323 = vector.extract_strided_slice %322 {offsets = [0, 0], sizes = [1, 32], strides = [1, 1]} : vector<16x32xf32> to vector<1x32xf32>
    %324 = vector.extract_strided_slice %322 {offsets = [8, 0], sizes = [1, 32], strides = [1, 1]} : vector<16x32xf32> to vector<1x32xf32>
    %325 = tpu.concatenate %323, %324 in 0 : vector<1x32xf32>, vector<1x32xf32> -> vector<2x32xf32>
    %c0_126 = arith.constant 0 : index
    %c0_127 = arith.constant 0 : index
    %326 = vector.load %arg16[%c0_126, %c0_127] : memref<2x32xf32, #tpu.memory_space<vmem>>, vector<2x32xf32>
    tpu.vector_store %arg16[%c0_126, %c0_127], %325 {strides = array<i32>} : memref<2x32xf32, #tpu.memory_space<vmem>>, vector<2x32xf32>,
    return
  }
  func.func @transform_0(%arg0: i32) -> (i32, i32) {
    %c0_i32 = arith.constant 0 : i32
    %c0_i32_0 = arith.constant 0 : i32
    %c0_i32_1 = arith.constant 0 : i32
    return %c0_i32, %c0_i32_0 : i32, i32
  }
  func.func @transform_1(%arg0: i32) -> (i32, i32) {
    %c0_i32 = arith.constant 0 : i32
    %c0_i32_0 = arith.constant 0 : i32
    %c0_i32_1 = arith.constant 0 : i32
    return %c0_i32, %c0_i32_0 : i32, i32
  }
  func.func @transform_2(%arg0: i32) -> (i32, i32) {
    %c0_i32 = arith.constant 0 : i32
    %c0_i32_0 = arith.constant 0 : i32
    %c0_i32_1 = arith.constant 0 : i32
    return %c0_i32, %c0_i32_0 : i32, i32
  }
  func.func @transform_3(%arg0: i32) -> (i32, i32, i32) {
    %c0_i32 = arith.constant 0 : i32
    %c0_i32_0 = arith.constant 0 : i32
    %c0_i32_1 = arith.constant 0 : i32
    %c0_i32_2 = arith.constant 0 : i32
    return %c0_i32, %c0_i32_0, %c0_i32_1 : i32, i32, i32
  }
  func.func @transform_4(%arg0: i32) -> (i32, i32, i32) {
    %c0_i32 = arith.constant 0 : i32
    %c0_i32_0 = arith.constant 0 : i32
    %c0_i32_1 = arith.constant 0 : i32
    %c0_i32_2 = arith.constant 0 : i32
    return %c0_i32, %c0_i32_0, %c0_i32_1 : i32, i32, i32
  }
  func.func @transform_5(%arg0: i32) -> (i32, i32, i32) {
    %c0_i32 = arith.constant 0 : i32
    %c0_i32_0 = arith.constant 0 : i32
    %c0_i32_1 = arith.constant 0 : i32
    %c0_i32_2 = arith.constant 0 : i32
    return %c0_i32, %c0_i32_0, %c0_i32_1 : i32, i32, i32
  }
  func.func @transform_6(%arg0: i32) -> (i32, i32, i32) {
    %c0_i32 = arith.constant 0 : i32
    %c0_i32_0 = arith.constant 0 : i32
    %c0_i32_1 = arith.constant 0 : i32
    %c0_i32_2 = arith.constant 0 : i32
    return %c0_i32, %c0_i32_0, %c0_i32_1 : i32, i32, i32
  }
  func.func @transform_7(%arg0: i32) -> (i32, i32, i32) {
    %c0_i32 = arith.constant 0 : i32
    %c0_i32_0 = arith.constant 0 : i32
    %c0_i32_1 = arith.constant 0 : i32
    %c0_i32_2 = arith.constant 0 : i32
    return %c0_i32, %c0_i32_0, %c0_i32_1 : i32, i32, i32
  }
  func.func @transform_8(%arg0: i32) -> (i32, i32, i32) {
    %c0_i32 = arith.constant 0 : i32
    %c0_i32_0 = arith.constant 0 : i32
    %c0_i32_1 = arith.constant 0 : i32
    %c0_i32_2 = arith.constant 0 : i32
    return %c0_i32, %c0_i32_0, %c0_i32_1 : i32, i32, i32
  }
  func.func @transform_9(%arg0: i32) -> (i32, i32, i32) {
    %c0_i32 = arith.constant 0 : i32
    %c0_i32_0 = arith.constant 0 : i32
    %c0_i32_1 = arith.constant 0 : i32
    %c0_i32_2 = arith.constant 0 : i32
    return %c0_i32, %c0_i32_0, %c0_i32_1 : i32, i32, i32
  }
  func.func @transform_10(%arg0: i32) -> (i32, i32, i32) {
    %c0_i32 = arith.constant 0 : i32
    %c0_i32_0 = arith.constant 0 : i32
    %c0_i32_1 = arith.constant 0 : i32
    %c0_i32_2 = arith.constant 0 : i32
    return %c0_i32, %c0_i32_0, %c0_i32_1 : i32, i32, i32
  }
  func.func @transform_11(%arg0: i32) -> (i32, i32, i32) {
    %c0_i32 = arith.constant 0 : i32
    %c0_i32_0 = arith.constant 0 : i32
    %c0_i32_1 = arith.constant 0 : i32
    %c0_i32_2 = arith.constant 0 : i32
    return %c0_i32, %c0_i32_0, %c0_i32_1 : i32, i32, i32
  }
  func.func @transform_12(%arg0: i32) -> (i32, i32, i32) {
    %c0_i32 = arith.constant 0 : i32
    %c0_i32_0 = arith.constant 0 : i32
    %c0_i32_1 = arith.constant 0 : i32
    %c0_i32_2 = arith.constant 0 : i32
    return %c0_i32, %c0_i32_0, %c0_i32_1 : i32, i32, i32
  }
  func.func @transform_13(%arg0: i32) -> (i32, i32, i32) {
    %c0_i32 = arith.constant 0 : i32
    %c0_i32_0 = arith.constant 0 : i32
    %c0_i32_1 = arith.constant 0 : i32
    %c0_i32_2 = arith.constant 0 : i32
    return %c0_i32, %c0_i32_0, %c0_i32_1 : i32, i32, i32
  }
  func.func @transform_14(%arg0: i32) -> (i32, i32, i32) {
    %c0_i32 = arith.constant 0 : i32
    %c0_i32_0 = arith.constant 0 : i32
    %c0_i32_1 = arith.constant 0 : i32
    %c0_i32_2 = arith.constant 0 : i32
    return %c0_i32, %c0_i32_0, %c0_i32_1 : i32, i32, i32
  }
  func.func @transform_15(%arg0: i32) -> (i32, i32) {
    %c0_i32 = arith.constant 0 : i32
    %c0_i32_0 = arith.constant 0 : i32
    %c0_i32_1 = arith.constant 0 : i32
    return %c0_i32, %c0_i32_0 : i32, i32
  }
}

</mosaic_0001>

<bundles_post_ra>
// kernel: tpu_custom_call.1
= control target key start
LH: loop header
LB: loop body
LE: loop exit
PB: predicated region body
PF: predicated region fallthrough
CT: control target
= control target key end

     0   :  { %20 = vsyncpa [#allocation3], 0  ;;  %s5084_s0 = inlined_call_operand.hbm [shape: f32[16,32], index: 0, kind: input, shape index: {}]   ;;  %s5085_s1 = inlined_call_operand.vmem [shape: f32[1,32], index: 1, kind: input, shape index: {}]   ;;  %s5086_s2 = inlined_call_operand.hbm [shape: f32[1,32], index: 2, kind: input, shape index: {}]   ;;  %s5087_s3 = inlined_call_operand.vmem [shape: bf16[2,32,96], index: 3, kind: input, shape index: {}]   ;;  %s5088_s4 = inlined_call_operand.vmem [shape: f32[2,1,96], index: 4, kind: input, shape index: {}]   ;;  %s5089_s5 = inlined_call_operand.vmem [shape: bf16[2,32,32], index: 5, kind: input, shape index: {}]   ;;  %s5090_s6 = inlined_call_operand.vmem [shape: f32[2,1,32], index: 6, kind: input, shape index: {}]   ;;  %s5091_s7 = inlined_call_operand.vmem [shape: f32[2,1,32], index: 7, kind: input, shape index: {}]   ;;  %s5092_s8 = inlined_call_operand.vmem [shape: f32[2,1,32], index: 8, kind: input, shape index: {}]   ;;  %s5093_s9 = inlined_call_operand.vmem [shape: bf16[2,32,64], index: 9, kind: input, shape index: {}]   ;;  %s5094_s10 = inlined_call_operand.hbm [shape: f32[2,1,64], index: 10, kind: input, shape index: {}]   ;;  %s5095_s11 = inlined_call_operand.vmem [shape: bf16[2,64,32], index: 11, kind: input, shape index: {}]   ;;  %s5096_s12 = inlined_call_operand.vmem [shape: f32[2,1,32], index: 12, kind: input, shape index: {}]   ;;  %s5097_s13 = inlined_call_operand.vmem [shape: f32[2,1,32], index: 13, kind: input, shape index: {}]   ;;  %s5098_s14 = inlined_call_operand.vmem [shape: f32[2,1,32], index: 14, kind: input, shape index: {}]   ;;  %s5099_s15 = inlined_call_operand.hbm [shape: f32[2,32], index: 15, kind: output, shape index: {}]  }
   0x1   :  { %21 = vsyncpa [#allocation6], 0 }
   0x2   :  { %22 = vsyncpa [#allocation4], 0  ;;  %s4383_s18 = smov [#allocation5]   ;;  %s4384_s20 = smov [#allocation2]  }
   0x3   :  { %s43_s19 = sshll.u32 %s4383_s18, 4  ;;  %s28_s21 = sshll.u32 %s4384_s20, 4  ;;  %s44_s19 = int_to_ptr.vmem [resolvable:$true] %s43_s19  ;;  %s4479_s21 = int_to_ptr.vmem [resolvable:$true] %s28_s21 }
   0x4   :  { %s4289_s24 = scalar_lea.hbm %s5086_s2, 16 }
   0x5   :  { %p4290_p0 = scmp.ne.s32.totalorder %s5086_s2, %s4289_s24  ;;  %p4293_p1 = scmp.lt.u32.totalorder %s4289_s24, %s5086_s2 }
   0x7   :  { %p4295_p2 = pnand %p4293_p1, %p4290_p0 }
   0x9   :  { %4298 = shalt.err (!%p4295_p2)
}
   0xa   :  { %s4299_s29 = scalar_lea.vmem %s44_s19, 16  ;;  %s4303_s30 = scalar_lea.vmem %s44_s19, 32 }
   0xb   :  { %p4300_p3 = scmp.ne.s32.totalorder %s44_s19, %s4299_s29  ;;  %p4304_p4 = scmp.lt.s32.totalorder %s44_s19, %s44_s19 }
   0xc   :  { %p4305_p5 = scmp.lt.s32.totalorder %s4303_s30, %s4299_s29 }
   0xe   :  { %p4306_p6 = por %p4305_p5, %p4304_p4 }
  0x10   :  { %p4307_p7 = pnand %p4306_p6, %p4300_p3 }
  0x12   :  { %4310 = shalt.err (!%p4307_p7)
}
  0x13   :  { %46 = dma.hbm_to_vmem [thread:$0]  %s5086_s2, 16, %s44_s19, [#allocation6]  }
  0x14   :  { %s4311_s22 = scalar_lea.hbm %s5084_s0, 256 }
  0x15   :  { %p4312_p8 = scmp.ne.s32.totalorder %s5084_s0, %s4311_s22  ;;  %p4315_p9 = scmp.lt.u32.totalorder %s4311_s22, %s5084_s0 }
  0x17   :  { %p4317_p10 = pnand %p4315_p9, %p4312_p8 }
  0x19   :  { %4320 = shalt.err (!%p4317_p10)
}
  0x1a   :  { %s4321_s27 = scalar_lea.vmem %s4479_s21, 256  ;;  %p4326_p12 = scmp.lt.s32.totalorder %s4479_s21, %s4479_s21 }
  0x1b   :  { %p4322_p11 = scmp.ne.s32.totalorder %s4479_s21, %s4321_s27  ;;  %p4327_p13 = scmp.lt.s32.totalorder %s4321_s27, %s4321_s27 }
  0x1d   :  { %p4328_p0 = por %p4327_p13, %p4326_p12 }
  0x1f   :  { %p4329_p1 = pnand %p4328_p0, %p4322_p11 }
  0x21   :  { %4332 = shalt.err (!%p4329_p1)
}
  0x22   :  { %s4385_s2 = smov 128   ;;  %s4386_s19 = smov 8  }
  0x23   :  { %34 = dma.hbm_to_vmem [thread:$0]  %s5084_s0, 256, %s4479_s21, [#allocation3], %s4385_s2, %s4385_s2, %s4386_s19  }
  0x24   :  { %s4387_s30 = smov [#allocation7]   ;;  %s4333_s20 = scalar_lea.hbm %s5094_s10, 32 }
  0x25   :  { %s66_s16 = sshll.u32 %s4387_s30, 4  ;;  %p4334_p2 = scmp.ne.s32.totalorder %s5094_s10, %s4333_s20  ;;  %s67_s16 = int_to_ptr.vmem [resolvable:$true] %s66_s16 }
  0x26   :  { %p4337_p3 = scmp.lt.u32.totalorder %s4333_s20, %s5094_s10 }
  0x28   :  { %p4339_p4 = pnand %p4337_p3, %p4334_p2 }
  0x2a   :  { %4342 = shalt.err (!%p4339_p4)
}
  0x2b   :  { %s4343_s26 = scalar_lea.vmem %s67_s16, 32  ;;  %p4348_p6 = scmp.lt.s32.totalorder %s67_s16, %s67_s16 }
  0x2c   :  { %p4344_p5 = scmp.ne.s32.totalorder %s67_s16, %s4343_s26  ;;  %p4349_p7 = scmp.lt.s32.totalorder %s4343_s26, %s4343_s26 }
  0x2e   :  { %p4350_p8 = por %p4349_p7, %p4348_p6 }
  0x30   :  { %p4351_p9 = pnand %p4350_p8, %p4344_p5 }
  0x32   :  { %4354 = shalt.err (!%p4351_p9)
}
  0x33   :  { %s4388_s0 = smov 16   ;;  %s4389_s21 = smov 1  }
  0x34   :  { %72 = dma.hbm_to_vmem [thread:$0]  %s5094_s10, 32, %s67_s16, [#allocation6], %s4388_s0, %s4388_s0, %s4389_s21  }
  0x35   :  { %4377 = dma.done.wait [#allocation3], 256  }
  0x36   :  { %4378 = vsyncadd [#allocation3], 4294967040 }
  0x37   :  { %4379 = dma.done.wait [#allocation6], 48  }
  0x38   :  { %4380 = vsyncadd [#allocation6], 4294967248  ;;  %vm95_vm0 = vcmask 261120   ;;  %v91_v0 = vld [vmem:[#allocation2] sm:$0xff]  ;;  %v92_v1 = vld [vmem:[#allocation2 + $0x8] sm:$0xff]  ;;  %v4390_v15 = vmov 0.0  }
  0x39   :  { %v96_v2 = vsel %vm95_vm0, %v91_v0, 0.0  ;;  %v99_v3 = vsel %vm95_vm0, %v92_v1, 0.0  ;;  %v4177_v14 = vld [vmem:[%s5087_s3] sm:$0xff]   ;;  %3899 = vmatprep.subr.bf16.mxu0 %v4390_v15  ;;  %vm4391_vm1 = vmmov 0   ;;  %v4178_v16 = vld [vmem:[%s5087_s3 + $0x8] sm:$0xff]   ;;  %3912 = vmatprep.subr.mxu1 %v4390_v15  ;;  %s4393_s22 = smov 120  }
  0x3a   :  { %97 = vadd.xlane.f32.xlu0 %v96_v2  ;;  %3903 = vmatprep.mubr.msk.bf16.mxu0 %vm4391_vm1, %v4390_v15  ;;  %v3686_v25 = vld [vmem:[%s5085_s1] ss:$0 sm:$0xff]  ;;  %v3687_v29 = vld [vmem:[#allocation5] ss:$0 sm:$0xff]  ;;  %s4392_s1 = smov 112   ;;  %s4394_s23 = smov 104  }
  0x3b   :  { %3900 = vmatpush3.bf16.msra.mxu0 %v4177_v14  ;;  %3914 = vmatprep.mubr.msk.f32.mxu1 %vm4391_vm1, %v4390_v15  ;;  %v3688_v34 = vld [vmem:[%s5088_s4] ss:$0 sm:$0xff]  ;;  %s4395_s24 = smov 96   ;;  %vm223_vm2 = vcmask 64512   ;;  %s4396_s25 = smov 64   ;;  %vm1560_vm3 = vcmask 130048  }
  0x3c   :  { %3901 = vmatprep.subr.bf16.mxu0 %v4390_v15  ;;  %s4397_s10 = smov 24   ;;  %vm1563_vm4 = vcmask 195584   ;;  %vm1806_vm5 = vcmask 523264   ;;  %vm3666_vm6 = vcmask 1040384   ;;  %vm3668_vm7 = vcmask 254976  }
  0x3e   :  { %100 = vadd.xlane.f32.xlu0 %v99_v3 }
  0x3f   :  { %3902 = vmatpush3.bf16.msra.mxu0 %v4178_v16 }
  0x40   :  { %3907 = vmatprep.subr.mxu0 %v4390_v15 }
  0xc7   :  { %v98_v4 = vpop.xlane.xlu0 %97 }
  0xc8   :  { %v103_v5 = vmul.f32 0.03125, %v98_v4 }
  0xca   :  { %v105_v6 = vsub.f32 %v91_v0, %v103_v5 }
  0xcb   :  { %v101_v7 = vpop.xlane.xlu0 %100 }
  0xcc   :  { %v104_v8 = vmul.f32 0.03125, %v101_v7  ;;  %v107_v9 = vmul.f32 %v105_v6, %v105_v6 }
  0xce   :  { %v106_v10 = vsub.f32 %v92_v1, %v104_v8  ;;  %v109_v11 = vsel %vm95_vm0, %v107_v9, 0.0 }
  0xcf   :  { %110 = vadd.xlane.f32.xlu1 %v109_v11 }
  0xd0   :  { %v108_v12 = vmul.f32 %v106_v10, %v106_v10 }
  0xd2   :  { %v112_v13 = vsel %vm95_vm0, %v108_v12, 0.0 }
  0xd3   :  { %113 = vadd.xlane.f32.xlu1 %v112_v13 }
 0x15c   :  { %v111_v17 = vpop.xlane.xlu1 %110 }
 0x15d   :  { %v115_v18 = vmul.f32 0.03125, %v111_v17 }
 0x15f   :  { %v117_v19 = vadd.f32 1e-12, %v115_v18 }
 0x160   :  { %v114_v20 = vpop.xlane.xlu1 %113 }
 0x161   :  { %4197 = vrsqrt.f32 %v117_v19  ;;  %v116_v21 = vmul.f32 0.03125, %v114_v20 }
 0x163   :  { %v118_v22 = vadd.f32 1e-12, %v116_v21 }
 0x165   :  { %4199 = vrsqrt.f32 %v118_v22 }
 0x16b   :  { %v4198_v23 = vpop.eup %4197 }
 0x16c   :  { %v121_v24 = vmul.f32 %v4198_v23, %v105_v6 }
 0x16e   :  { %v129_v28 = vmul.f32 %v3686_v25, %v121_v24 }
 0x16f   :  { %v4200_v26 = vpop.eup %4199 }
 0x170   :  { %v122_v27 = vmul.f32 %v4200_v26, %v106_v10  ;;  %v4546_v31 = vadd.f32 %v3687_v29, %v129_v28 }
 0x172   :  { %v130_v30 = vmul.f32 %v3686_v25, %v122_v27 }
 0x174   :  { %v4548_v32 = vadd.f32 %v3687_v29, %v130_v30 }
 0x176   :  { %v139_v33 = vpack.c.bf16 %v4548_v32, %v4546_v31 }
 0x178   :  { %3904 = vmatmul.mubr.msk.bf16.vlgmr.msra.gmra.mrb[0].mxu0 %vm95_vm0, %v139_v33 }
 0x179   :  { %3909 = vmatprep.mubr.msk.f32.mxu0 %vm4391_vm1, %v4390_v15 }
 0x24b   :  { %v200_v35 = vpop.f32.mrb[0].mxu0 }
 0x24c   :  { %v4558_v36 = vadd.f32 %v3688_v34, %v200_v35  ;;  %v3905_v37 = vpop.f32.mrb[1].mxu0 }
 0x24d   :  { %v203_v38 = vpop.f32.mrb[2].mxu0 }
 0x24e   :  { %213 = vrot.lane.b32.xlu1 %v4558_v36, %s4392_s1  ;;  %209 = vrot.lane.b32.xlu0 %v4558_v36, %s4393_s22  ;;  %v3906_v39 = vpop.f32.mrb[3].mxu0  ;;  %v4564_v40 = vadd.f32 %v3688_v34, %v203_v38 }
 0x252   :  { %217 = vrot.lane.b32.xlu0 %v4558_v36, %s4394_s23  ;;  %211 = vrot.lane.b32.xlu1 %v4564_v40, %s4393_s22 }
 0x256   :  { %221 = vrot.lane.b32.xlu0 %v4558_v36, %s4395_s24  ;;  %215 = vrot.lane.b32.xlu1 %v4564_v40, %s4392_s1 }
 0x25a   :  { %219 = vrot.lane.b32.xlu1 %v4564_v40, %s4394_s23 }
 0x25e   :  { %298 = vrot.lane.b32.xlu1 %v4564_v40, %s4395_s24 }
 0x2c0   :  { %v4578_v41 = vpop.permute.xlu1 %213  ;;  %v4580_v42 = vpop.permute.xlu0 %209 }
 0x2c1   :  { %374 = vrot.lane.b32.xlu0 %v4580_v42, %s4395_s24 }
 0x2c4   :  { %v4584_v43 = vpop.permute.xlu0 %217  ;;  %v4586_v44 = vpop.permute.xlu1 %211 }
 0x2c5   :  { %526 = vrot.lane.b32.xlu0 %v4578_v41, %s4395_s24  ;;  %450 = vrot.lane.b32.xlu1 %v4586_v44, %s4395_s24 }
 0x2c8   :  { %v222_v45 = vpop.permute.xlu0 %221  ;;  %v4592_v46 = vpop.permute.xlu1 %215 }
 0x2c9   :  { %678 = vrot.lane.b32.xlu0 %v4584_v43, %s4395_s24  ;;  %3908 = vmatpush3.xpose.msk.msra.mxu0 %vm223_vm2, %v222_v45 }
 0x2ca   :  { %602 = vrot.lane.b32.xlu1 %v4592_v46, %s4395_s24  ;;  %3922 = vmatprep.subr.mxu0 %v4390_v15 }
 0x2cc   :  { %3910 = vmatmul.mubr.msk.f32.vlgmr.msra.gmra.mrb[4].mxu0 %vm223_vm2, %v4558_v36  ;;  %v4602_v47 = vpop.permute.xlu1 %219 }
 0x2cd   :  { %3924 = vmatprep.mubr.msk.f32.mxu0 %vm4391_vm1, %v4390_v15 }
 0x2ce   :  { %754 = vrot.lane.b32.xlu1 %v4602_v47, %s4395_s24 }
 0x2d0   :  { %v299_v48 = vpop.permute.xlu1 %298 }
 0x2d1   :  { %3913 = vmatpush3.xpose.msk.msra.mxu1 %vm223_vm2, %v299_v48 }
 0x2d2   :  { %3917 = vmatprep.subr.mxu1 %v4390_v15 }
 0x2d4   :  { %3915 = vmatmul.mubr.msk.f32.vlgmr.msra.gmra.mrb[0].mxu1 %vm223_vm2, %v4564_v40 }
 0x2d5   :  { %3919 = vmatprep.mubr.msk.f32.mxu1 %vm4391_vm1, %v4390_v15 }
 0x333   :  { %v375_v49 = vpop.permute.xlu0 %374 }
 0x334   :  { %3918 = vmatpush3.xpose.msk.msra.mxu1 %vm223_vm2, %v375_v49 }
 0x335   :  { %3927 = vmatprep.subr.mxu1 %v4390_v15 }
 0x337   :  { %v527_v50 = vpop.permute.xlu0 %526  ;;  %3920 = vmatmul.mubr.msk.f32.vlgmr.msra.gmra.mrb[2].mxu1 %vm223_vm2, %v4580_v42  ;;  %v451_v51 = vpop.permute.xlu1 %450 }
 0x338   :  { %3923 = vmatpush3.xpose.msk.msra.mxu0 %vm223_vm2, %v451_v51  ;;  %3928 = vmatpush3.xpose.msk.msra.mxu1 %vm223_vm2, %v527_v50 }
 0x339   :  { %3929 = vmatprep.mubr.msk.f32.mxu1 %vm4391_vm1, %v4390_v15  ;;  %3932 = vmatprep.subr.mxu0 %v4390_v15 }
 0x33a   :  { %3937 = vmatprep.subr.mxu1 %v4390_v15 }
 0x33b   :  { %v679_v52 = vpop.permute.xlu0 %678  ;;  %3925 = vmatmul.mubr.msk.f32.vlgmr.msra.gmra.mrb[6].mxu0 %vm223_vm2, %v4586_v44  ;;  %3930 = vmatmul.mubr.msk.f32.vlgmr.msra.gmra.mrb[4].mxu1 %vm223_vm2, %v4578_v41 }
 0x33c   :  { %v603_v53 = vpop.permute.xlu1 %602  ;;  %3938 = vmatpush3.xpose.msk.msra.mxu1 %vm223_vm2, %v679_v52  ;;  %3934 = vmatprep.mubr.msk.f32.mxu0 %vm4391_vm1, %v4390_v15 }
 0x33d   :  { %3933 = vmatpush3.xpose.msk.msra.mxu0 %vm223_vm2, %v603_v53  ;;  %3939 = vmatprep.mubr.msk.f32.mxu1 %vm4391_vm1, %v4390_v15 }
 0x33e   :  { %3942 = vmatprep.subr.mxu0 %v4390_v15  ;;  %3947 = vmatprep.subr.mxu1 %v4390_v15 }
 0x33f   :  { %3940 = vmatmul.mubr.msk.f32.vlgmr.msra.gmra.mrb[6].mxu1 %vm223_vm2, %v4584_v43 }
 0x340   :  { %3935 = vmatmul.mubr.msk.f32.vlgmr.msra.gmra.mrb[8].mxu0 %vm223_vm2, %v4592_v46  ;;  %v755_v54 = vpop.permute.xlu1 %754  ;;  %3949 = vmatprep.mubr.msk.f32.mxu1 %vm4391_vm1, %v4390_v15 }
 0x341   :  { %3943 = vmatpush3.xpose.msk.msra.mxu0 %vm223_vm2, %v755_v54  ;;  %3944 = vmatprep.mubr.msk.f32.mxu0 %vm4391_vm1, %v4390_v15 }
 0x342   :  { %3952 = vmatprep.subr.mxu0 %v4390_v15 }
 0x344   :  { %3945 = vmatmul.mubr.msk.f32.vlgmr.msra.gmra.mrb[10].mxu0 %vm223_vm2, %v4602_v47 }
 0x345   :  { %3954 = vmatprep.mubr.msk.f32.mxu0 %vm4391_vm1, %v4390_v15 }
 0x39f   :  { %v294_v55 = vpop.f32.mrb[4].mxu0 }
 0x3a0   :  { %v830_v56 = vmul.f32 0.35355338, %v294_v55  ;;  %v3911_v57 = vpop.f32.mrb[5].mxu0 }
 0x3a2   :  { %v838_v58 = vsel %vm223_vm2, %v830_v56, -inf }
 0x3a3   :  { %839 = vmax.xlane.f32.xlu0 %v838_v58 }
 0x3a7   :  { %v370_v59 = vpop.f32.mrb[0].mxu1 }
 0x3a8   :  { %v831_v60 = vmul.f32 0.35355338, %v370_v59  ;;  %v3916_v61 = vpop.f32.mrb[1].mxu1 }
 0x3aa   :  { %v841_v62 = vsel %vm223_vm2, %v831_v60, -inf }
 0x3ab   :  { %842 = vmax.xlane.f32.xlu1 %v841_v62 }
 0x40a   :  { %v446_v63 = vpop.f32.mrb[2].mxu1 }
 0x40b   :  { %v832_v0 = vmul.f32 0.35355338, %v446_v63  ;;  %v3921_v1 = vpop.f32.mrb[3].mxu1 }
 0x40d   :  { %v844_v2 = vsel %vm223_vm2, %v832_v0, -inf }
 0x40e   :  { %v598_v3 = vpop.f32.mrb[4].mxu1  ;;  %845 = vmax.xlane.f32.xlu0 %v844_v2  ;;  %v522_v4 = vpop.f32.mrb[6].mxu0 }
 0x40f   :  { %v833_v5 = vmul.f32 0.35355338, %v522_v4  ;;  %v3926_v6 = vpop.f32.mrb[7].mxu0  ;;  %v3931_v7 = vpop.f32.mrb[5].mxu1  ;;  %v834_v8 = vmul.f32 0.35355338, %v598_v3 }
 0x411   :  { %v847_v9 = vsel %vm223_vm2, %v833_v5, -inf  ;;  %v850_v17 = vsel %vm223_vm2, %v834_v8, -inf }
 0x412   :  { %v750_v10 = vpop.f32.mrb[6].mxu1  ;;  %848 = vmax.xlane.f32.xlu0 %v847_v9 }
 0x413   :  { %v674_v11 = vpop.f32.mrb[8].mxu0  ;;  %v3941_v12 = vpop.f32.mrb[7].mxu1  ;;  %v836_v16 = vmul.f32 0.35355338, %v750_v10 }
 0x414   :  { %v835_v13 = vmul.f32 0.35355338, %v674_v11  ;;  %v3936_v14 = vpop.f32.mrb[9].mxu0 }
 0x415   :  { %v856_v22 = vsel %vm223_vm2, %v836_v16, -inf }
 0x416   :  { %851 = vmax.xlane.f32.xlu0 %v850_v17  ;;  %v853_v18 = vsel %vm223_vm2, %v835_v13, -inf }
 0x417   :  { %854 = vmax.xlane.f32.xlu1 %v853_v18  ;;  %v826_v19 = vpop.f32.mrb[10].mxu0 }
 0x418   :  { %v837_v20 = vmul.f32 0.35355338, %v826_v19  ;;  %v3946_v21 = vpop.f32.mrb[11].mxu0 }
 0x41a   :  { %857 = vmax.xlane.f32.xlu0 %v856_v22  ;;  %v859_v23 = vsel %vm223_vm2, %v837_v20, -inf }
 0x41b   :  { %860 = vmax.xlane.f32.xlu1 %v859_v23 }
 0x42c   :  { %1002 = vrot.lane.b32.xlu1 %v4564_v40, %s4396_s25 }
 0x430   :  { %1078 = vrot.lane.b32.xlu1 %v4580_v42, %s4396_s25  ;;  %926 = vrot.lane.b32.xlu0 %v4558_v36, %s4396_s25  ;;  %v840_v24 = vpop.xlane.xlu0 %839 }
 0x431   :  { %v862_v25 = vsub.f32 %v830_v56, %v840_v24 }
 0x433   :  { %v870_v26 = vmul.f32 1.442695, %v862_v25 }
 0x434   :  { %1154 = vrot.lane.b32.xlu1 %v4586_v44, %s4396_s25  ;;  %1230 = vrot.lane.b32.xlu0 %v4578_v41, %s4396_s25 }
 0x435   :  { %4201 = vpow2.f32 %v870_v26 }
 0x438   :  { %1306 = vrot.lane.b32.xlu1 %v4592_v46, %s4396_s25  ;;  %v843_v27 = vpop.xlane.xlu1 %842 }
 0x439   :  { %v863_v28 = vsub.f32 %v831_v60, %v843_v27 }
 0x43b   :  { %v872_v29 = vmul.f32 1.442695, %v863_v28 }
 0x43d   :  { %4203 = vpow2.f32 %v872_v29 }
 0x43f   :  { %v4670_v30 = vpop.eup %4201 }
 0x440   :  { %v886_v33 = vsel %vm223_vm2, %v4670_v30, 0.0 }
 0x447   :  { %v4674_v34 = vpop.eup %4203 }
 0x448   :  { %v889_v35 = vsel %vm223_vm2, %v4674_v34, 0.0 }
 0x453   :  { %887 = vadd.xlane.f32.xlu0 %v886_v33 }
 0x45c   :  { %890 = vadd.xlane.f32.xlu1 %v889_v35 }
 0x49b   :  { %v846_v36 = vpop.xlane.xlu0 %845 }
 0x49c   :  { %v864_v37 = vsub.f32 %v832_v0, %v846_v36 }
 0x49e   :  { %v874_v38 = vmul.f32 1.442695, %v864_v37 }
 0x49f   :  { %v849_v39 = vpop.xlane.xlu0 %848 }
 0x4a0   :  { %4205 = vpow2.f32 %v874_v38  ;;  %v865_v40 = vsub.f32 %v833_v5, %v849_v39 }
 0x4a2   :  { %v876_v41 = vmul.f32 1.442695, %v865_v40 }
 0x4a3   :  { %v852_v42 = vpop.xlane.xlu0 %851 }
 0x4a4   :  { %4207 = vpow2.f32 %v876_v41  ;;  %v866_v44 = vsub.f32 %v834_v8, %v852_v42  ;;  %v855_v45 = vpop.xlane.xlu1 %854  ;;  %v4179_v42 = vld [vmem:[%s5089_s5] sm:$0xff]  }
 0x4a5   :  { %v867_v46 = vsub.f32 %v835_v13, %v855_v45 }
 0x4a6   :  { %v878_v48 = vmul.f32 1.442695, %v866_v44 }
 0x4a7   :  { %v880_v49 = vmul.f32 1.442695, %v867_v46  ;;  %v858_v50 = vpop.xlane.xlu0 %857  ;;  %v4180_v46 = vld [vmem:[%s5089_s5 + $0x8] sm:$0xff]  }
 0x4a8   :  { %4209 = vpow2.f32 %v878_v48  ;;  %v868_v51 = vsub.f32 %v836_v16, %v858_v50  ;;  %v861_v52 = vpop.xlane.xlu1 %860 }
 0x4a9   :  { %4211 = vpow2.f32 %v880_v49  ;;  %v869_v53 = vsub.f32 %v837_v20, %v861_v52 }
 0x4aa   :  { %v4206_v54 = vpop.eup %4205  ;;  %v882_v55 = vmul.f32 1.442695, %v868_v51 }
 0x4ab   :  { %v884_v56 = vmul.f32 1.442695, %v869_v53  ;;  %v927_v57 = vpop.permute.xlu0 %926  ;;  %v892_v58 = vsel %vm223_vm2, %v4206_v54, 0.0 }
 0x4ac   :  { %4213 = vpow2.f32 %v882_v55  ;;  %v1003_v59 = vpop.permute.xlu1 %1002  ;;  %893 = vadd.xlane.f32.xlu0 %v892_v58  ;;  %3948 = vmatpush3.msra.mxu1 %v927_v57 }
 0x4ad   :  { %4215 = vpow2.f32 %v884_v56  ;;  %3953 = vmatpush3.msra.mxu0 %v1003_v59  ;;  %3957 = vmatprep.subr.mxu1 %v4390_v15 }
 0x4ae   :  { %v4208_v60 = vpop.eup %4207  ;;  %3962 = vmatprep.subr.mxu0 %v4390_v15 }
 0x4af   :  { %v895_v61 = vsel %vm223_vm2, %v4208_v60, 0.0  ;;  %v1231_v7 = vpop.permute.xlu0 %1230 }
 0x4b0   :  { %896 = vadd.xlane.f32.xlu1 %v895_v61  ;;  %v1079_v6 = vpop.permute.xlu1 %1078 }
 0x4b2   :  { %v4210_v62 = vpop.eup %4209 }
 0x4b3   :  { %v4212_v63 = vpop.eup %4211  ;;  %v898_v0 = vsel %vm223_vm2, %v4210_v62, 0.0 }
 0x4b4   :  { %899 = vadd.xlane.f32.xlu0 %v898_v0  ;;  %v901_v1 = vsel %vm223_vm2, %v4212_v63, 0.0  ;;  %v1155_v8 = vpop.permute.xlu1 %1154 }
 0x4b5   :  { %902 = vadd.xlane.f32.xlu1 %v901_v1 }
 0x4b6   :  { %v4684_v2 = vpop.eup %4213 }
 0x4b7   :  { %v4686_v3 = vpop.eup %4215  ;;  %v904_v4 = vsel %vm223_vm2, %v4684_v2, 0.0 }
 0x4b8   :  { %905 = vadd.xlane.f32.xlu0 %v904_v4  ;;  %v907_v5 = vsel %vm223_vm2, %v4686_v3, 0.0  ;;  %v1307_v10 = vpop.permute.xlu1 %1306 }
 0x4b9   :  { %908 = vadd.xlane.f32.xlu1 %v907_v5 }
 0x4ca   :  { %1458 = vrot.lane.b32.xlu1 %v4602_v47, %s4396_s25 }
 0x4ce   :  { %1382 = vrot.lane.b32.xlu0 %v4584_v43, %s4396_s25 }
 0x4e0   :  { %v888_v9 = vpop.xlane.xlu0 %887 }
 0x4e1   :  { %4217 = vrcp.f32 %v888_v9 }
 0x4e9   :  { %v891_v11 = vpop.xlane.xlu1 %890 }
 0x4ea   :  { %4219 = vrcp.f32 %v891_v11 }
 0x4eb   :  { %v4218_v12 = vpop.eup %4217 }
 0x4ec   :  { %v918_v13 = vmul.f32 %v4218_v12, %v4670_v30  ;;  %v3716_v12 = vld [vmem:[%s5090_s6] ss:$0 sm:$0xff] }
 0x4ee   :  { %3950 = vmatmul.mubr.msk.f32.vlgmr.msra.gmra.mrb[8].mxu1 %vm223_vm2, %v918_v13 }
 0x4ef   :  { %3958 = vmatpush3.msra.mxu1 %v1079_v6  ;;  %3959 = vmatprep.mubr.msk.f32.mxu1 %vm4391_vm1, %v4390_v15 }
 0x4f0   :  { %3967 = vmatprep.subr.mxu1 %v4390_v15 }
 0x4f4   :  { %v4220_v43 = vpop.eup %4219 }
 0x4f5   :  { %v919_v47 = vmul.f32 %v4220_v43, %v4674_v34 }
 0x4f7   :  { %3955 = vmatmul.mubr.msk.f32.vlgmr.msra.gmra.mrb[12].mxu0 %vm223_vm2, %v919_v47 }
 0x4f8   :  { %3963 = vmatpush3.msra.mxu0 %v1155_v8  ;;  %3964 = vmatprep.mubr.msk.f32.mxu0 %vm4391_vm1, %v4390_v15 }
 0x4f9   :  { %3972 = vmatprep.subr.mxu0 %v4390_v15 }
 0x539   :  { %v894_v14 = vpop.xlane.xlu0 %893 }
 0x53a   :  { %4221 = vrcp.f32 %v894_v14 }
 0x53d   :  { %v897_v16 = vpop.xlane.xlu1 %896 }
 0x53e   :  { %4223 = vrcp.f32 %v897_v16 }
 0x541   :  { %v900_v17 = vpop.xlane.xlu0 %899 }
 0x542   :  { %4225 = vrcp.f32 %v900_v17  ;;  %v903_v18 = vpop.xlane.xlu1 %902 }
 0x543   :  { %4227 = vrcp.f32 %v903_v18 }
 0x544   :  { %v4222_v19 = vpop.eup %4221 }
 0x545   :  { %v920_v20 = vmul.f32 %v4222_v19, %v4206_v54  ;;  %v906_v21 = vpop.xlane.xlu0 %905 }
 0x546   :  { %4229 = vrcp.f32 %v906_v21  ;;  %v909_v22 = vpop.xlane.xlu1 %908 }
 0x547   :  { %4231 = vrcp.f32 %v909_v22  ;;  %3960 = vmatmul.mubr.msk.f32.vlgmr.msra.gmra.mrb[10].mxu1 %vm223_vm2, %v920_v20 }
 0x548   :  { %v4224_v23 = vpop.eup %4223  ;;  %3968 = vmatpush3.msra.mxu1 %v1231_v7  ;;  %3969 = vmatprep.mubr.msk.f32.mxu1 %vm4391_vm1, %v4390_v15 }
 0x549   :  { %v921_v24 = vmul.f32 %v4224_v23, %v4208_v60  ;;  %3977 = vmatprep.subr.mxu1 %v4390_v15  ;;  %v1383_v29 = vpop.permute.xlu0 %1382 }
 0x54a   :  { %v1459_v33 = vpop.permute.xlu1 %1458 }
 0x54b   :  { %3965 = vmatmul.mubr.msk.f32.vlgmr.msra.gmra.mrb[14].mxu0 %vm223_vm2, %v921_v24 }
 0x54c   :  { %v4226_v25 = vpop.eup %4225  ;;  %3973 = vmatpush3.msra.mxu0 %v1307_v10  ;;  %3974 = vmatprep.mubr.msk.f32.mxu0 %vm4391_vm1, %v4390_v15 }
 0x54d   :  { %v4228_v26 = vpop.eup %4227  ;;  %v922_v27 = vmul.f32 %v4226_v25, %v4210_v62  ;;  %3982 = vmatprep.subr.mxu0 %v4390_v15 }
 0x54e   :  { %v923_v28 = vmul.f32 %v4228_v26, %v4212_v63 }
 0x54f   :  { %3970 = vmatmul.mubr.msk.f32.vlgmr.msra.gmra.mrb[12].mxu1 %vm223_vm2, %v922_v27 }
 0x550   :  { %v4230_v30 = vpop.eup %4229  ;;  %3975 = vmatmul.mubr.msk.f32.vlgmr.msra.gmra.mrb[16].mxu0 %vm223_vm2, %v923_v28  ;;  %3978 = vmatpush3.msra.mxu1 %v1383_v29 }
 0x551   :  { %v4232_v34 = vpop.eup %4231  ;;  %v924_v35 = vmul.f32 %v4230_v30, %v4684_v2  ;;  %3983 = vmatpush3.msra.mxu0 %v1459_v33  ;;  %3979 = vmatprep.mubr.msk.f32.mxu1 %vm4391_vm1, %v4390_v15  ;;  %v4182_v33 = vld [vmem:[%s5093_s9 + $0x8] sm:$0xff]  }
 0x552   :  { %v925_v36 = vmul.f32 %v4232_v34, %v4686_v3  ;;  %3984 = vmatprep.mubr.msk.f32.mxu0 %vm4391_vm1, %v4390_v15  ;;  %3987 = vmatprep.subr.bf16.mxu1 %v4390_v15 }
 0x553   :  { %3980 = vmatmul.mubr.msk.f32.vlgmr.msra.gmra.mrb[14].mxu1 %vm223_vm2, %v924_v35  ;;  %3995 = vmatprep.subr.bf16.mxu0 %v4390_v15 }
 0x554   :  { %3985 = vmatmul.mubr.msk.f32.vlgmr.msra.gmra.mrb[18].mxu0 %vm223_vm2, %v925_v36  ;;  %3991 = vmatprep.mubr.msk.bf16.mxu1 %vm4391_vm1, %v4390_v15 }
 0x555   :  { %3999 = vmatprep.mubr.msk.bf16.mxu0 %vm4391_vm1, %v4390_v15  ;;  %3988 = vmatpush3.bf16.msra.mxu1 %v4179_v42  ;;  %v3720_v42 = vld [vmem:[%s5091_s7] ss:$0 sm:$0xff] }
 0x556   :  { %3989 = vmatprep.subr.bf16.mxu1 %v4390_v15 }
 0x559   :  { %3990 = vmatpush3.bf16.msra.mxu1 %v4180_v46 }
 0x55a   :  { %4003 = vmatprep.subr.bf16.mxu1 %v4390_v15 }
 0x5c1   :  { %v998_v37 = vpop.f32.mrb[8].mxu1 }
 0x5c2   :  { %v3951_v38 = vpop.f32.mrb[9].mxu1 }
 0x5ca   :  { %v1074_v39 = vpop.f32.mrb[12].mxu0 }
 0x5cb   :  { %v3956_v40 = vpop.f32.mrb[13].mxu0 }
 0x61a   :  { %v1150_v41 = vpop.f32.mrb[10].mxu1 }
 0x61b   :  { %v3961_v44 = vpop.f32.mrb[11].mxu1 }
 0x61e   :  { %v1226_v45 = vpop.f32.mrb[14].mxu0 }
 0x61f   :  { %v4147_v48 = vpack.i.bf16 %v1226_v45, %v1150_v41  ;;  %v3966_v49 = vpop.f32.mrb[15].mxu0 }
 0x621   :  { %4148 = vrot.lane.b32.xlu0 %v4147_v48, %s4386_s19  ;;  %v3721_v48 = vld [vmem:[%s5092_s8] ss:$0 sm:$0xff] }
 0x622   :  { %v1302_v50 = vpop.f32.mrb[12].mxu1 }
 0x623   :  { %v1378_v51 = vpop.f32.mrb[16].mxu0  ;;  %v3971_v52 = vpop.f32.mrb[13].mxu1 }
 0x624   :  { %v4152_v53 = vpack.i.bf16 %v1378_v51, %v1302_v50  ;;  %v3976_v54 = vpop.f32.mrb[17].mxu0 }
 0x625   :  { %v4184_v54 = vld [vmem:[%s5095_s11 + $0x8] sm:$0xff]  }
 0x626   :  { %4153 = vrot.lane.b32.xlu1 %v4152_v53, %s4388_s0  ;;  %v1454_v55 = vpop.f32.mrb[14].mxu1  ;;  %v4183_v53 = vld [vmem:[%s5095_s11] sm:$0xff]  }
 0x627   :  { %v1530_v56 = vpop.f32.mrb[18].mxu0  ;;  %v3981_v57 = vpop.f32.mrb[15].mxu1 }
 0x628   :  { %v4157_v58 = vpack.i.bf16 %v1530_v56, %v1454_v55  ;;  %v3986_v59 = vpop.f32.mrb[19].mxu0  ;;  %v4185_v55 = vld [vmem:[%s5095_s11 + $0x10] sm:$0xff]   ;;  %v4186_v56 = vld [vmem:[%s5095_s11 + $0x18] sm:$0xff]  }
 0x629   :  { %v3722_v57 = vld [vmem:[#allocation7] ss:$0 sm:$0xff] }
 0x62a   :  { %4158 = vrot.lane.b32.xlu0 %v4157_v58, %s4397_s10 }
 0x693   :  { %v4149_v60 = vpop.permute.xlu0 %4148 }
 0x694   :  { %v4151_v62 = vunpack.i.h.bf16 %v4149_v60  ;;  %v4150_v63 = vunpack.i.l.bf16 %v4149_v60 }
 0x696   :  { %v1559_v3 = vsel %vm223_vm2, %v1074_v39, %v4151_v62  ;;  %v1558_v4 = vsel %vm223_vm2, %v998_v37, %v4150_v63 }
 0x698   :  { %v4154_v61 = vpop.permute.xlu1 %4153 }
 0x699   :  { %v4156_v0 = vunpack.i.h.bf16 %v4154_v61  ;;  %v4155_v1 = vunpack.i.l.bf16 %v4154_v61 }
 0x69b   :  { %v1562_v7 = vsel %vm1560_vm3, %v1559_v3, %v4156_v0  ;;  %v1561_v8 = vsel %vm1560_vm3, %v1558_v4, %v4155_v1 }
 0x69c   :  { %v4159_v2 = vpop.permute.xlu0 %4158 }
 0x69d   :  { %v4161_v5 = vunpack.i.h.bf16 %v4159_v2  ;;  %v4160_v6 = vunpack.i.l.bf16 %v4159_v2 }
 0x69f   :  { %v1565_v9 = vsel %vm1563_vm4, %v1562_v7, %v4161_v5  ;;  %v1564_v10 = vsel %vm1563_vm4, %v1561_v8, %v4160_v6 }
 0x6a0   :  { %v1566_v11 = vpack.c.bf16 %v1565_v9, %v1564_v10 }
 0x6a2   :  { %3992 = vmatmul.mubr.msk.bf16.vlgmr.msra.gmra.mrb[16].mxu1 %vm95_vm0, %v1566_v11 }
 0x6a3   :  { %4011 = vmatprep.mubr.msk.bf16.mxu1 %vm4391_vm1, %v4390_v15  ;;  %4004 = vmatpush3.bf16.msra.mxu1 %v4183_v53 }
 0x6a4   :  { %4005 = vmatprep.subr.bf16.mxu1 %v4390_v15 }
 0x6a7   :  { %4006 = vmatpush3.bf16.msra.mxu1 %v4184_v54 }
 0x6a8   :  { %4007 = vmatprep.subr.bf16.mxu1 %v4390_v15 }
 0x6ab   :  { %4008 = vmatpush3.bf16.msra.mxu1 %v4185_v55  ;;  %v3733_v55 = vld [vmem:[%s5098_s14] ss:$0 sm:$0xff] }
 0x6ac   :  { %4009 = vmatprep.subr.bf16.mxu1 %v4390_v15 }
 0x6af   :  { %4010 = vmatpush3.bf16.msra.mxu1 %v4186_v56 }
 0x6b0   :  { %4033 = vmatprep.subr.mxu1 %v4390_v15 }
 0x775   :  { %v1627_v13 = vpop.f32.mrb[16].mxu1 }
 0x776   :  { %v1628_v43 = vadd.f32 %v3716_v12, %v1627_v13  ;;  %v3993_v47 = vpop.f32.mrb[17].mxu1 }
 0x777   :  { %v1630_v14 = vpop.f32.mrb[18].mxu1 }
 0x778   :  { %v1631_v16 = vadd.f32 %v3716_v12, %v1630_v14  ;;  %v3994_v17 = vpop.f32.mrb[19].mxu1  ;;  %v1634_v18 = vadd.f32 %v1628_v43, %v4546_v31 }
 0x77a   :  { %v1638_v19 = vsel %vm95_vm0, %v1634_v18, 0.0  ;;  %v1635_v20 = vadd.f32 %v1631_v16, %v4548_v32  ;;  %v4181_v32 = vld [vmem:[%s5093_s9] sm:$0xff]  }
 0x77b   :  { %1639 = vadd.xlane.f32.xlu1 %v1638_v19  ;;  %3996 = vmatpush3.bf16.msra.mxu0 %v4181_v32 }
 0x77c   :  { %v1641_v21 = vsel %vm95_vm0, %v1635_v20, 0.0  ;;  %3997 = vmatprep.subr.bf16.mxu0 %v4390_v15 }
 0x77d   :  { %1642 = vadd.xlane.f32.xlu0 %v1641_v21 }
 0x77f   :  { %3998 = vmatpush3.bf16.msra.mxu0 %v4182_v33 }
 0x780   :  { %4015 = vmatprep.subr.bf16.mxu0 %v4390_v15 }
 0x808   :  { %v1640_v22 = vpop.xlane.xlu1 %1639 }
 0x809   :  { %v1644_v23 = vmul.f32 0.03125, %v1640_v22 }
 0x80a   :  { %v1643_v24 = vpop.xlane.xlu0 %1642 }
 0x80b   :  { %v1646_v25 = vsub.f32 %v1634_v18, %v1644_v23  ;;  %v1645_v26 = vmul.f32 0.03125, %v1643_v24  ;;  %v3726_v18 = vld [vmem:[%s5096_s12] ss:$0 sm:$0xff] }
 0x80d   :  { %v1647_v27 = vsub.f32 %v1635_v20, %v1645_v26  ;;  %v1648_v28 = vmul.f32 %v1646_v25, %v1646_v25 }
 0x80f   :  { %v1650_v29 = vsel %vm95_vm0, %v1648_v28, 0.0  ;;  %v1649_v30 = vmul.f32 %v1647_v27, %v1647_v27 }
 0x810   :  { %1651 = vadd.xlane.f32.xlu0 %v1650_v29 }
 0x811   :  { %v1653_v31 = vsel %vm95_vm0, %v1649_v30, 0.0 }
 0x814   :  { %1654 = vadd.xlane.f32.xlu0 %v1653_v31 }
 0x89d   :  { %v1652_v34 = vpop.xlane.xlu0 %1651 }
 0x89e   :  { %v1656_v35 = vmul.f32 0.03125, %v1652_v34 }
 0x8a0   :  { %v1658_v36 = vadd.f32 1e-12, %v1656_v35 }
 0x8a1   :  { %v1655_v37 = vpop.xlane.xlu0 %1654 }
 0x8a2   :  { %4233 = vrsqrt.f32 %v1658_v36  ;;  %v1657_v38 = vmul.f32 0.03125, %v1655_v37 }
 0x8a4   :  { %v1659_v39 = vadd.f32 1e-12, %v1657_v38 }
 0x8a6   :  { %4235 = vrsqrt.f32 %v1659_v39  ;;  %v4187_v39 = vld [vmem:[%s5087_s3 + $0x10] sm:$0xff]  }
 0x8ac   :  { %v4234_v40 = vpop.eup %4233 }
 0x8ad   :  { %v1662_v41 = vmul.f32 %v4234_v40, %v1646_v25  ;;  %v4188_v40 = vld [vmem:[%s5087_s3 + $0x18] sm:$0xff]  }
 0x8af   :  { %v1670_v45 = vmul.f32 %v3720_v42, %v1662_v41 }
 0x8b0   :  { %v4236_v44 = vpop.eup %4235 }
 0x8b1   :  { %v1663_v46 = vmul.f32 %v4236_v44, %v1647_v27  ;;  %v1678_v50 = vadd.f32 %v3721_v48, %v1670_v45 }
 0x8b3   :  { %v1671_v49 = vmul.f32 %v3720_v42, %v1663_v46 }
 0x8b5   :  { %v1679_v51 = vadd.f32 %v3721_v48, %v1671_v49 }
 0x8b7   :  { %v1680_v52 = vpack.c.bf16 %v1679_v51, %v1678_v50 }
 0x8b9   :  { %4000 = vmatmul.mubr.msk.bf16.vlgmr.msra.gmra.mrb[20].mxu0 %vm95_vm0, %v1680_v52 }
 0x8ba   :  { %4019 = vmatprep.mubr.msk.bf16.mxu0 %vm4391_vm1, %v4390_v15  ;;  %4016 = vmatpush3.bf16.msra.mxu0 %v4187_v39 }
 0x8bb   :  { %4017 = vmatprep.subr.bf16.mxu0 %v4390_v15 }
 0x8be   :  { %4018 = vmatpush3.bf16.msra.mxu0 %v4188_v40 }
 0x8bf   :  { %4023 = vmatprep.subr.mxu0 %v4390_v15 }
 0x98c   :  { %v1741_v58 = vpop.f32.mrb[20].mxu0 }
 0x98d   :  { %v1742_v59 = vadd.f32 %v3722_v57, %v1741_v58  ;;  %v4001_v60 = vpop.f32.mrb[21].mxu0 }
 0x98e   :  { %v1744_v61 = vpop.f32.mrb[22].mxu0  ;;  %v3739_v60 = vld [vmem:[%s5088_s4 + $0x1] ss:$0 sm:$0xff]  ;;  %s4398_s4 = smov [#allocation8]  }
 0x98f   :  { %v1748_v62 = vmul.f32 %v1742_v59, %v1742_v59  ;;  %v1745_v63 = vadd.f32 %v3722_v57, %v1744_v61  ;;  %v4002_v0 = vpop.f32.mrb[23].mxu0 }
 0x991   :  { %v1750_v1 = vmul.f32 %v1748_v62, %v1742_v59  ;;  %v1749_v2 = vmul.f32 %v1745_v63, %v1745_v63 }
 0x993   :  { %v1752_v3 = vmul.f32 0.044715, %v1750_v1  ;;  %v1751_v4 = vmul.f32 %v1749_v2, %v1745_v63 }
 0x995   :  { %v1754_v5 = vadd.f32 %v1752_v3, %v1742_v59  ;;  %v1753_v6 = vmul.f32 0.044715, %v1751_v4 }
 0x997   :  { %v1756_v7 = vmul.f32 0.7978846, %v1754_v5  ;;  %v1755_v8 = vadd.f32 %v1753_v6, %v1745_v63 }
 0x999   :  { %4237 = vtanh.f32 %v1756_v7  ;;  %v1757_v9 = vmul.f32 0.7978846, %v1755_v8 }
 0x99b   :  { %4239 = vtanh.f32 %v1757_v9 }
 0x9a3   :  { %v4238_v10 = vpop.eup %4237 }
 0x9a4   :  { %v1760_v11 = vadd.f32 1.0, %v4238_v10 }
 0x9a5   :  { %v4240_v12 = vpop.eup %4239 }
 0x9a6   :  { %v1762_v13 = vmul.f32 0.5, %v1760_v11  ;;  %v1761_v43 = vadd.f32 1.0, %v4240_v12 }
 0x9a8   :  { %v1763_v47 = vmul.f32 0.5, %v1761_v43  ;;  %v1764_v14 = vmul.f32 %v1762_v13, %v1742_v59 }
 0x9aa   :  { %v1765_v16 = vmul.f32 %v1763_v47, %v1745_v63 }
 0x9ac   :  { %v1766_v17 = vpack.c.bf16 %v1765_v16, %v1764_v14 }
 0x9ae   :  { %4012 = vmatmul.mubr.msk.bf16.vlgmr.msra.gmra.mrb[20].mxu1 %vm1806_vm5, %v1766_v17 }
 0x9af   :  { %4035 = vmatprep.mubr.msk.f32.mxu1 %vm4391_vm1, %v4390_v15 }
 0xa81   :  { %v1844_v19 = vpop.f32.mrb[20].mxu1 }
 0xa82   :  { %v1845_v20 = vadd.f32 %v3726_v18, %v1844_v19  ;;  %v4013_v21 = vpop.f32.mrb[21].mxu1 }
 0xa83   :  { %v1847_v22 = vpop.f32.mrb[22].mxu1 }
 0xa84   :  { %v1848_v23 = vadd.f32 %v3726_v18, %v1847_v22  ;;  %v4014_v24 = vpop.f32.mrb[23].mxu1  ;;  %v1851_v25 = vadd.f32 %v1845_v20, %v1678_v50  ;;  %v3732_v50 = vld [vmem:[%s5097_s13] ss:$0 sm:$0xff] }
 0xa86   :  { %v1855_v26 = vsel %vm95_vm0, %v1851_v25, 0.0  ;;  %v1852_v27 = vadd.f32 %v1848_v23, %v1679_v51 }
 0xa87   :  { %1856 = vadd.xlane.f32.xlu1 %v1855_v26 }
 0xa88   :  { %v1858_v28 = vsel %vm95_vm0, %v1852_v27, 0.0 }
 0xa89   :  { %1859 = vadd.xlane.f32.xlu0 %v1858_v28 }
 0xb14   :  { %v1857_v29 = vpop.xlane.xlu1 %1856 }
 0xb15   :  { %v1861_v30 = vmul.f32 0.03125, %v1857_v29 }
 0xb16   :  { %v1860_v31 = vpop.xlane.xlu0 %1859 }
 0xb17   :  { %v1863_v32 = vsub.f32 %v1851_v25, %v1861_v30  ;;  %v1862_v33 = vmul.f32 0.03125, %v1860_v31 }
 0xb19   :  { %v1864_v34 = vsub.f32 %v1852_v27, %v1862_v33  ;;  %v1865_v35 = vmul.f32 %v1863_v32, %v1863_v32 }
 0xb1b   :  { %v1867_v36 = vsel %vm95_vm0, %v1865_v35, 0.0  ;;  %v1866_v37 = vmul.f32 %v1864_v34, %v1864_v34 }
 0xb1c   :  { %1868 = vadd.xlane.f32.xlu1 %v1867_v36 }
 0xb1d   :  { %v1870_v38 = vsel %vm95_vm0, %v1866_v37, 0.0 }
 0xb1e   :  { %1871 = vadd.xlane.f32.xlu0 %v1870_v38 }
 0xba9   :  { %v1869_v41 = vpop.xlane.xlu1 %1868 }
 0xbaa   :  { %v1873_v42 = vmul.f32 0.03125, %v1869_v41 }
 0xbab   :  { %v1872_v44 = vpop.xlane.xlu0 %1871 }
 0xbac   :  { %v1875_v45 = vadd.f32 1e-12, %v1873_v42  ;;  %v1874_v46 = vmul.f32 0.03125, %v1872_v44 }
 0xbae   :  { %4241 = vrsqrt.f32 %v1875_v45  ;;  %v1876_v48 = vadd.f32 1e-12, %v1874_v46 }
 0xbb0   :  { %4243 = vrsqrt.f32 %v1876_v48 }
 0xbb8   :  { %v4242_v49 = vpop.eup %4241 }
 0xbb9   :  { %v1879_v51 = vmul.f32 %v4242_v49, %v1863_v32 }
 0xbba   :  { %v4244_v52 = vpop.eup %4243 }
 0xbbb   :  { %v1887_v53 = vmul.f32 %v3732_v50, %v1879_v51  ;;  %v1880_v54 = vmul.f32 %v4244_v52, %v1864_v34 }
 0xbbd   :  { %v1888_v56 = vmul.f32 %v3732_v50, %v1880_v54  ;;  %v4816_v57 = vadd.f32 %v3733_v55, %v1887_v53 }
 0xbbf   :  { %v4818_v58 = vadd.f32 %v3733_v55, %v1888_v56 }
 0xbc1   :  { %v1897_v59 = vpack.c.bf16 %v4818_v58, %v4816_v57 }
 0xbc3   :  { %4020 = vmatmul.mubr.msk.bf16.vlgmr.msra.gmra.mrb[24].mxu0 %vm95_vm0, %v1897_v59 }
 0xbc4   :  { %4025 = vmatprep.mubr.msk.f32.mxu0 %vm4391_vm1, %v4390_v15 }
 0xc96   :  { %v1960_v61 = vpop.f32.mrb[24].mxu0 }
 0xc97   :  { %v4828_v62 = vadd.f32 %v3739_v60, %v1960_v61  ;;  %v4021_v63 = vpop.f32.mrb[25].mxu0 }
 0xc98   :  { %v1963_v0 = vpop.f32.mrb[26].mxu0 }
 0xc99   :  { %v4830_v1 = vadd.f32 %v3739_v60, %v1963_v0  ;;  %1969 = vrot.lane.b32.xlu1 %v4828_v62, %s4393_s22  ;;  %v4022_v2 = vpop.f32.mrb[27].mxu0 }
 0xc9b   :  { %1971 = vrot.lane.b32.xlu0 %v4830_v1, %s4393_s22 }
 0xc9d   :  { %1973 = vrot.lane.b32.xlu1 %v4828_v62, %s4392_s1 }
 0xc9f   :  { %1979 = vrot.lane.b32.xlu0 %v4830_v1, %s4394_s23 }
 0xca1   :  { %1975 = vrot.lane.b32.xlu1 %v4830_v1, %s4392_s1  ;;  %s3676_s1 = sshll.u32 %s4398_s4, 4  ;;  %s3677_s1 = int_to_ptr.vmem [resolvable:$true] %s3676_s1 }
 0xca2   :  { %s4355_s22 = scalar_lea.vmem %s3677_s1, 32  ;;  %p4360_p11 = scmp.lt.s32.totalorder %s3677_s1, %s3677_s1 }
 0xca3   :  { %2057 = vrot.lane.b32.xlu0 %v4830_v1, %s4395_s24  ;;  %p4356_p10 = scmp.ne.s32.totalorder %s3677_s1, %s4355_s22  ;;  %p4361_p12 = scmp.lt.s32.totalorder %s4355_s22, %s4355_s22 }
 0xca5   :  { %1977 = vrot.lane.b32.xlu1 %v4828_v62, %s4394_s23  ;;  %p4362_p13 = por %p4361_p12, %p4360_p11 }
 0xca7   :  { %p4363_p0 = pnand %p4362_p13, %p4356_p10 }
 0xca9   :  { %1981 = vrot.lane.b32.xlu1 %v4828_v62, %s4395_s24 }
 0xd0b   :  { %v4848_v3 = vpop.permute.xlu1 %1969 }
 0xd0c   :  { %2133 = vrot.lane.b32.xlu1 %v4848_v3, %s4395_s24 }
 0xd0d   :  { %v4852_v4 = vpop.permute.xlu0 %1971 }
 0xd0e   :  { %2209 = vrot.lane.b32.xlu0 %v4852_v4, %s4395_s24 }
 0xd0f   :  { %v4856_v5 = vpop.permute.xlu1 %1973 }
 0xd10   :  { %2285 = vrot.lane.b32.xlu1 %v4856_v5, %s4395_s24 }
 0xd11   :  { %v4864_v7 = vpop.permute.xlu0 %1979 }
 0xd13   :  { %v4860_v6 = vpop.permute.xlu1 %1975 }
 0xd14   :  { %2361 = vrot.lane.b32.xlu0 %v4860_v6, %s4395_s24 }
 0xd15   :  { %v2058_v10 = vpop.permute.xlu0 %2057 }
 0xd17   :  { %v4866_v8 = vpop.permute.xlu1 %1977 }
 0xd18   :  { %2437 = vrot.lane.b32.xlu1 %v4866_v8, %s4395_s24  ;;  %2513 = vrot.lane.b32.xlu0 %v4864_v7, %s4395_s24 }
 0xd1b   :  { %v1982_v9 = vpop.permute.xlu1 %1981 }
 0xd1c   :  { %4024 = vmatpush3.xpose.msk.msra.mxu0 %vm223_vm2, %v1982_v9 }
 0xd1d   :  { %4028 = vmatprep.subr.mxu0 %v4390_v15 }
 0xd1f   :  { %4026 = vmatmul.mubr.msk.f32.vlgmr.msra.gmra.mrb[28].mxu0 %vm223_vm2, %v4828_v62 }
 0xd20   :  { %4029 = vmatpush3.xpose.msk.msra.mxu0 %vm223_vm2, %v2058_v10  ;;  %4030 = vmatprep.mubr.msk.f32.mxu0 %vm4391_vm1, %v4390_v15 }
 0xd21   :  { %4038 = vmatprep.subr.mxu0 %v4390_v15 }
 0xd23   :  { %4031 = vmatmul.mubr.msk.f32.vlgmr.msra.gmra.mrb[30].mxu0 %vm223_vm2, %v4830_v1 }
 0xd24   :  { %4040 = vmatprep.mubr.msk.f32.mxu0 %vm4391_vm1, %v4390_v15 }
 0xd7e   :  { %v2134_v11 = vpop.permute.xlu1 %2133 }
 0xd7f   :  { %4034 = vmatpush3.xpose.msk.msra.mxu1 %vm223_vm2, %v2134_v11 }
 0xd80   :  { %v2210_v12 = vpop.permute.xlu0 %2209  ;;  %4043 = vmatprep.subr.mxu1 %v4390_v15 }
 0xd81   :  { %4039 = vmatpush3.xpose.msk.msra.mxu0 %vm223_vm2, %v2210_v12 }
 0xd82   :  { %4036 = vmatmul.mubr.msk.f32.vlgmr.msra.gmra.mrb[24].mxu1 %vm223_vm2, %v4848_v3  ;;  %v2286_v13 = vpop.permute.xlu1 %2285  ;;  %4048 = vmatprep.subr.mxu0 %v4390_v15 }
 0xd83   :  { %4044 = vmatpush3.xpose.msk.msra.mxu1 %vm223_vm2, %v2286_v13  ;;  %4045 = vmatprep.mubr.msk.f32.mxu1 %vm4391_vm1, %v4390_v15 }
 0xd84   :  { %4041 = vmatmul.mubr.msk.f32.vlgmr.msra.gmra.mrb[32].mxu0 %vm223_vm2, %v4852_v4  ;;  %4053 = vmatprep.subr.mxu1 %v4390_v15 }
 0xd85   :  { %4050 = vmatprep.mubr.msk.f32.mxu0 %vm4391_vm1, %v4390_v15 }
 0xd86   :  { %4046 = vmatmul.mubr.msk.f32.vlgmr.msra.gmra.mrb[26].mxu1 %vm223_vm2, %v4856_v5  ;;  %v2362_v43 = vpop.permute.xlu0 %2361 }
 0xd87   :  { %4049 = vmatpush3.xpose.msk.msra.mxu0 %vm223_vm2, %v2362_v43  ;;  %4055 = vmatprep.mubr.msk.f32.mxu1 %vm4391_vm1, %v4390_v15 }
 0xd88   :  { %4058 = vmatprep.subr.mxu0 %v4390_v15 }
 0xd8a   :  { %v2438_v47 = vpop.permute.xlu1 %2437  ;;  %4051 = vmatmul.mubr.msk.f32.vlgmr.msra.gmra.mrb[34].mxu0 %vm223_vm2, %v4860_v6  ;;  %v2514_v14 = vpop.permute.xlu0 %2513 }
 0xd8b   :  { %4054 = vmatpush3.xpose.msk.msra.mxu1 %vm223_vm2, %v2438_v47  ;;  %4059 = vmatpush3.xpose.msk.msra.mxu0 %vm223_vm2, %v2514_v14 }
 0xd8c   :  { %4060 = vmatprep.mubr.msk.f32.mxu0 %vm4391_vm1, %v4390_v15  ;;  %4063 = vmatprep.subr.mxu1 %v4390_v15 }
 0xd8d   :  { %4068 = vmatprep.subr.mxu0 %v4390_v15 }
 0xd8e   :  { %4056 = vmatmul.mubr.msk.f32.vlgmr.msra.gmra.mrb[28].mxu1 %vm223_vm2, %v4866_v8  ;;  %4061 = vmatmul.mubr.msk.f32.vlgmr.msra.gmra.mrb[36].mxu0 %vm223_vm2, %v4864_v7 }
 0xd8f   :  { %4070 = vmatprep.mubr.msk.f32.mxu0 %vm4391_vm1, %v4390_v15  ;;  %4065 = vmatprep.mubr.msk.f32.mxu1 %vm4391_vm1, %v4390_v15 }
 0xdf2   :  { %v2053_v16 = vpop.f32.mrb[28].mxu0 }
 0xdf3   :  { %v2589_v17 = vmul.f32 0.35355338, %v2053_v16  ;;  %v4027_v18 = vpop.f32.mrb[29].mxu0 }
 0xdf5   :  { %v2597_v19 = vsel %vm223_vm2, %v2589_v17, -inf }
 0xdf6   :  { %2598 = vmax.xlane.f32.xlu1 %v2597_v19  ;;  %v2129_v20 = vpop.f32.mrb[30].mxu0 }
 0xdf7   :  { %v2590_v21 = vmul.f32 0.35355338, %v2129_v20  ;;  %v4032_v22 = vpop.f32.mrb[31].mxu0 }
 0xdf9   :  { %v2600_v23 = vsel %vm223_vm2, %v2590_v21, -inf }
 0xdfa   :  { %2601 = vmax.xlane.f32.xlu0 %v2600_v23 }
 0xe55   :  { %v2205_v24 = vpop.f32.mrb[24].mxu1 }
 0xe56   :  { %v2591_v25 = vmul.f32 0.35355338, %v2205_v24  ;;  %v4037_v26 = vpop.f32.mrb[25].mxu1 }
 0xe57   :  { %v2281_v27 = vpop.f32.mrb[32].mxu0 }
 0xe58   :  { %v2592_v28 = vmul.f32 0.35355338, %v2281_v27  ;;  %v4042_v29 = vpop.f32.mrb[33].mxu0  ;;  %v2603_v30 = vsel %vm223_vm2, %v2591_v25, -inf }
 0xe59   :  { %v2357_v31 = vpop.f32.mrb[26].mxu1  ;;  %2604 = vmax.xlane.f32.xlu0 %v2603_v30 }
 0xe5a   :  { %v2593_v32 = vmul.f32 0.35355338, %v2357_v31  ;;  %v4047_v33 = vpop.f32.mrb[27].mxu1  ;;  %v2606_v35 = vsel %vm223_vm2, %v2592_v28, -inf }
 0xe5c   :  { %v2609_v34 = vsel %vm223_vm2, %v2593_v32, -inf }
 0xe5d   :  { %2610 = vmax.xlane.f32.xlu1 %v2609_v34  ;;  %2607 = vmax.xlane.f32.xlu0 %v2606_v35  ;;  %v2433_v36 = vpop.f32.mrb[34].mxu0 }
 0xe5e   :  { %v2594_v37 = vmul.f32 0.35355338, %v2433_v36  ;;  %v4052_v38 = vpop.f32.mrb[35].mxu0 }
 0xe60   :  { %v2612_v39 = vsel %vm223_vm2, %v2594_v37, -inf }
 0xe61   :  { %v2509_v40 = vpop.f32.mrb[28].mxu1  ;;  %2613 = vmax.xlane.f32.xlu0 %v2612_v39  ;;  %v2585_v41 = vpop.f32.mrb[36].mxu0 }
 0xe62   :  { %v2595_v42 = vmul.f32 0.35355338, %v2509_v40  ;;  %v2596_v44 = vmul.f32 0.35355338, %v2585_v41  ;;  %v4057_v45 = vpop.f32.mrb[29].mxu1  ;;  %v4062_v46 = vpop.f32.mrb[37].mxu0 }
 0xe64   :  { %v2615_v48 = vsel %vm223_vm2, %v2595_v42, -inf  ;;  %v2618_v49 = vsel %vm223_vm2, %v2596_v44, -inf }
 0xe65   :  { %2616 = vmax.xlane.f32.xlu1 %v2615_v48  ;;  %2619 = vmax.xlane.f32.xlu0 %v2618_v49 }
 0xe76   :  { %2685 = vrot.lane.b32.xlu1 %v4828_v62, %s4396_s25 }
 0xe7a   :  { %2837 = vrot.lane.b32.xlu1 %v4848_v3, %s4396_s25 }
 0xe7b   :  { %2761 = vrot.lane.b32.xlu0 %v4830_v1, %s4396_s25 }
 0xe7e   :  { %2913 = vrot.lane.b32.xlu1 %v4852_v4, %s4396_s25 }
 0xe7f   :  { %3065 = vrot.lane.b32.xlu0 %v4860_v6, %s4396_s25 }
 0xe82   :  { %2989 = vrot.lane.b32.xlu1 %v4856_v5, %s4396_s25 }
 0xe83   :  { %v2599_v53 = vpop.xlane.xlu1 %2598 }
 0xe84   :  { %v2621_v54 = vsub.f32 %v2589_v17, %v2599_v53 }
 0xe86   :  { %v2629_v55 = vmul.f32 1.442695, %v2621_v54 }
 0xe87   :  { %v2602_v50 = vpop.xlane.xlu0 %2601 }
 0xe88   :  { %v2622_v51 = vsub.f32 %v2590_v21, %v2602_v50 }
 0xe8a   :  { %v2631_v52 = vmul.f32 1.442695, %v2622_v51 }
 0xe8c   :  { %4245 = vpow2.f32 %v2631_v52 }
 0xe8d   :  { %4247 = vpow2.f32 %v2629_v55 }
 0xe96   :  { %v4940_v56 = vpop.eup %4245 }
 0xe97   :  { %v2648_v59 = vsel %vm223_vm2, %v4940_v56, 0.0  ;;  %v4944_v60 = vpop.eup %4247 }
 0xe98   :  { %v2645_v61 = vsel %vm223_vm2, %v4944_v60, 0.0 }
 0xe9e   :  { %2649 = vadd.xlane.f32.xlu0 %v2648_v59 }
 0xea6   :  { %2646 = vadd.xlane.f32.xlu1 %v2645_v61 }
 0xee6   :  { %v2605_v62 = vpop.xlane.xlu0 %2604 }
 0xee7   :  { %v2623_v63 = vsub.f32 %v2591_v25, %v2605_v62 }
 0xee9   :  { %v2633_v0 = vmul.f32 1.442695, %v2623_v63 }
 0xeea   :  { %v2611_v1 = vpop.xlane.xlu1 %2610  ;;  %v2608_v2 = vpop.xlane.xlu0 %2607 }
 0xeeb   :  { %4249 = vpow2.f32 %v2633_v0  ;;  %v2625_v3 = vsub.f32 %v2593_v32, %v2611_v1  ;;  %v2624_v4 = vsub.f32 %v2592_v28, %v2608_v2 }
 0xeed   :  { %v2637_v5 = vmul.f32 1.442695, %v2625_v3  ;;  %v2635_v6 = vmul.f32 1.442695, %v2624_v4  ;;  %v4189_v4 = vld [vmem:[%s5089_s5 + $0x10] sm:$0xff]  }
 0xeee   :  { %v2614_v9 = vpop.xlane.xlu0 %2613 }
 0xeef   :  { %4251 = vpow2.f32 %v2637_v5  ;;  %v2626_v10 = vsub.f32 %v2594_v37, %v2614_v9  ;;  %v4190_v9 = vld [vmem:[%s5089_s5 + $0x18] sm:$0xff]  }
 0xef0   :  { %4253 = vpow2.f32 %v2635_v6 }
 0xef1   :  { %v2639_v11 = vmul.f32 1.442695, %v2626_v10 }
 0xef2   :  { %v2617_v12 = vpop.xlane.xlu1 %2616  ;;  %v2620_v13 = vpop.xlane.xlu0 %2619 }
 0xef3   :  { %4255 = vpow2.f32 %v2639_v11  ;;  %v2627_v43 = vsub.f32 %v2595_v42, %v2617_v12  ;;  %v2628_v47 = vsub.f32 %v2596_v44, %v2620_v13 }
 0xef5   :  { %v4250_v14 = vpop.eup %4249  ;;  %v2641_v16 = vmul.f32 1.442695, %v2627_v43  ;;  %v2643_v17 = vmul.f32 1.442695, %v2628_v47 }
 0xef6   :  { %v2686_v18 = vpop.permute.xlu1 %2685  ;;  %v2762_v19 = vpop.permute.xlu0 %2761  ;;  %v2651_v20 = vsel %vm223_vm2, %v4250_v14, 0.0 }
 0xef7   :  { %4257 = vpow2.f32 %v2641_v16  ;;  %4064 = vmatpush3.msra.mxu1 %v2686_v18  ;;  %2652 = vadd.xlane.f32.xlu1 %v2651_v20 }
 0xef8   :  { %4259 = vpow2.f32 %v2643_v17  ;;  %4069 = vmatpush3.msra.mxu0 %v2762_v19  ;;  %4073 = vmatprep.subr.mxu1 %v4390_v15 }
 0xef9   :  { %v4252_v21 = vpop.eup %4251  ;;  %4078 = vmatprep.subr.mxu0 %v4390_v15 }
 0xefa   :  { %v4254_v22 = vpop.eup %4253  ;;  %v2657_v23 = vsel %vm223_vm2, %v4252_v21, 0.0  ;;  %v2838_v31 = vpop.permute.xlu1 %2837 }
 0xefb   :  { %2658 = vadd.xlane.f32.xlu1 %v2657_v23  ;;  %v2654_v24 = vsel %vm223_vm2, %v4254_v22, 0.0  ;;  %v3066_v32 = vpop.permute.xlu0 %3065 }
 0xefc   :  { %2655 = vadd.xlane.f32.xlu0 %v2654_v24 }
 0xefd   :  { %v4256_v25 = vpop.eup %4255 }
 0xefe   :  { %v2660_v26 = vsel %vm223_vm2, %v4256_v25, 0.0  ;;  %v2914_v33 = vpop.permute.xlu1 %2913 }
 0xf00   :  { %2661 = vadd.xlane.f32.xlu0 %v2660_v26 }
 0xf01   :  { %v4954_v27 = vpop.eup %4257 }
 0xf02   :  { %v4956_v28 = vpop.eup %4259  ;;  %v2663_v29 = vsel %vm223_vm2, %v4954_v27, 0.0  ;;  %v2990_v35 = vpop.permute.xlu1 %2989 }
 0xf03   :  { %2664 = vadd.xlane.f32.xlu1 %v2663_v29  ;;  %v2666_v30 = vsel %vm223_vm2, %v4956_v28, 0.0 }
 0xf04   :  { %2667 = vadd.xlane.f32.xlu0 %v2666_v30 }
 0xf14   :  { %3141 = vrot.lane.b32.xlu1 %v4866_v8, %s4396_s25 }
 0xf1a   :  { %3217 = vrot.lane.b32.xlu0 %v4864_v7, %s4396_s25 }
 0xf2b   :  { %v2650_v34 = vpop.xlane.xlu0 %2649 }
 0xf2c   :  { %4261 = vrcp.f32 %v2650_v34 }
 0xf33   :  { %v2647_v36 = vpop.xlane.xlu1 %2646 }
 0xf34   :  { %4263 = vrcp.f32 %v2647_v36 }
 0xf36   :  { %v4262_v37 = vpop.eup %4261 }
 0xf37   :  { %v2678_v38 = vmul.f32 %v4262_v37, %v4940_v56  ;;  %v3772_v37 = vld [vmem:[%s5090_s6 + $0x1] ss:$0 sm:$0xff] }
 0xf39   :  { %4071 = vmatmul.mubr.msk.f32.vlgmr.msra.gmra.mrb[38].mxu0 %vm223_vm2, %v2678_v38 }
 0xf3a   :  { %4079 = vmatpush3.msra.mxu0 %v2914_v33  ;;  %4080 = vmatprep.mubr.msk.f32.mxu0 %vm4391_vm1, %v4390_v15 }
 0xf3b   :  { %4088 = vmatprep.subr.mxu0 %v4390_v15 }
 0xf3e   :  { %v4264_v7 = vpop.eup %4263 }
 0xf3f   :  { %v2677_v8 = vmul.f32 %v4264_v7, %v4944_v60 }
 0xf41   :  { %4066 = vmatmul.mubr.msk.f32.vlgmr.msra.gmra.mrb[30].mxu1 %vm223_vm2, %v2677_v8 }
 0xf42   :  { %4074 = vmatpush3.msra.mxu1 %v2838_v31  ;;  %4075 = vmatprep.mubr.msk.f32.mxu1 %vm4391_vm1, %v4390_v15 }
 0xf43   :  { %4083 = vmatprep.subr.mxu1 %v4390_v15 }
 0xf84   :  { %v2653_v39 = vpop.xlane.xlu1 %2652 }
 0xf85   :  { %4265 = vrcp.f32 %v2653_v39 }
 0xf88   :  { %v2659_v40 = vpop.xlane.xlu1 %2658 }
 0xf89   :  { %4267 = vrcp.f32 %v2659_v40  ;;  %v2656_v41 = vpop.xlane.xlu0 %2655 }
 0xf8a   :  { %4269 = vrcp.f32 %v2656_v41 }
 0xf8d   :  { %v2662_v42 = vpop.xlane.xlu0 %2661 }
 0xf8e   :  { %4271 = vrcp.f32 %v2662_v42 }
 0xf8f   :  { %v4266_v44 = vpop.eup %4265 }
 0xf90   :  { %v2679_v45 = vmul.f32 %v4266_v44, %v4250_v14  ;;  %v2665_v46 = vpop.xlane.xlu1 %2664 }
 0xf91   :  { %4273 = vrcp.f32 %v2665_v46  ;;  %v2668_v48 = vpop.xlane.xlu0 %2667 }
 0xf92   :  { %4275 = vrcp.f32 %v2668_v48  ;;  %4076 = vmatmul.mubr.msk.f32.vlgmr.msra.gmra.mrb[32].mxu1 %vm223_vm2, %v2679_v45 }
 0xf93   :  { %v4268_v49 = vpop.eup %4267  ;;  %4084 = vmatpush3.msra.mxu1 %v2990_v35  ;;  %4085 = vmatprep.mubr.msk.f32.mxu1 %vm4391_vm1, %v4390_v15 }
 0xf94   :  { %v4270_v50 = vpop.eup %4269  ;;  %v2681_v51 = vmul.f32 %v4268_v49, %v4252_v21  ;;  %v3142_v52 = vpop.permute.xlu1 %3141  ;;  %4093 = vmatprep.subr.mxu1 %v4390_v15 }
 0xf95   :  { %v2680_v53 = vmul.f32 %v4270_v50, %v4254_v22  ;;  %v3218_v59 = vpop.permute.xlu0 %3217 }
 0xf96   :  { %4086 = vmatmul.mubr.msk.f32.vlgmr.msra.gmra.mrb[34].mxu1 %vm223_vm2, %v2681_v51 }
 0xf97   :  { %4081 = vmatmul.mubr.msk.f32.vlgmr.msra.gmra.mrb[40].mxu0 %vm223_vm2, %v2680_v53  ;;  %4094 = vmatpush3.msra.mxu1 %v3142_v52 }
 0xf98   :  { %v4272_v54 = vpop.eup %4271  ;;  %4089 = vmatpush3.msra.mxu0 %v3066_v32  ;;  %4090 = vmatprep.mubr.msk.f32.mxu0 %vm4391_vm1, %v4390_v15 }
 0xf99   :  { %v2682_v55 = vmul.f32 %v4272_v54, %v4256_v25  ;;  %4098 = vmatprep.subr.mxu0 %v4390_v15  ;;  %4095 = vmatprep.mubr.msk.f32.mxu1 %vm4391_vm1, %v4390_v15 }
 0xf9a   :  { %4103 = vmatprep.subr.bf16.mxu1 %v4390_v15 }
 0xf9b   :  { %v4274_v56 = vpop.eup %4273  ;;  %4091 = vmatmul.mubr.msk.f32.vlgmr.msra.gmra.mrb[42].mxu0 %vm223_vm2, %v2682_v55 }
 0xf9c   :  { %v4276_v60 = vpop.eup %4275  ;;  %v2683_v61 = vmul.f32 %v4274_v56, %v4954_v27  ;;  %4099 = vmatpush3.msra.mxu0 %v3218_v59  ;;  %4100 = vmatprep.mubr.msk.f32.mxu0 %vm4391_vm1, %v4390_v15  ;;  %v4192_v59 = vld [vmem:[%s5093_s9 + $0x18] sm:$0xff]  }
 0xf9d   :  { %v2684_v62 = vmul.f32 %v4276_v60, %v4956_v28  ;;  %4111 = vmatprep.subr.bf16.mxu0 %v4390_v15 }
 0xf9e   :  { %4096 = vmatmul.mubr.msk.f32.vlgmr.msra.gmra.mrb[36].mxu1 %vm223_vm2, %v2683_v61 }
 0xf9f   :  { %4101 = vmatmul.mubr.msk.f32.vlgmr.msra.gmra.mrb[44].mxu0 %vm223_vm2, %v2684_v62  ;;  %4107 = vmatprep.mubr.msk.bf16.mxu1 %vm4391_vm1, %v4390_v15 }
 0xfa0   :  { %4115 = vmatprep.mubr.msk.bf16.mxu0 %vm4391_vm1, %v4390_v15  ;;  %4104 = vmatpush3.bf16.msra.mxu1 %v4189_v4  ;;  %v3778_v4 = vld [vmem:[%s5091_s7 + $0x1] ss:$0 sm:$0xff] }
 0xfa1   :  { %4105 = vmatprep.subr.bf16.mxu1 %v4390_v15 }
 0xfa4   :  { %4106 = vmatpush3.bf16.msra.mxu1 %v4190_v9 }
 0xfa5   :  { %4119 = vmatprep.subr.bf16.mxu1 %v4390_v15 }
0x100c   :  { %v2833_v63 = vpop.f32.mrb[38].mxu0 }
0x100d   :  { %v4072_v0 = vpop.f32.mrb[39].mxu0 }
0x1014   :  { %v2757_v1 = vpop.f32.mrb[30].mxu1 }
0x1015   :  { %v4067_v2 = vpop.f32.mrb[31].mxu1 }
0x1065   :  { %v2909_v3 = vpop.f32.mrb[32].mxu1 }
0x1066   :  { %v4077_v5 = vpop.f32.mrb[33].mxu1 }
0x1069   :  { %v3061_v6 = vpop.f32.mrb[34].mxu1 }
0x106a   :  { %v2985_v10 = vpop.f32.mrb[40].mxu0  ;;  %v4087_v11 = vpop.f32.mrb[35].mxu1 }
0x106b   :  { %v4162_v12 = vpack.i.bf16 %v2985_v10, %v2909_v3  ;;  %v4082_v13 = vpop.f32.mrb[41].mxu0  ;;  %v3779_v10 = vld [vmem:[%s5092_s8 + $0x1] ss:$0 sm:$0xff] }
0x106d   :  { %4163 = vrot.lane.b32.xlu1 %v4162_v12, %s4386_s19 }
0x106e   :  { %v3137_v43 = vpop.f32.mrb[42].mxu0 }
0x106f   :  { %v4167_v47 = vpack.i.bf16 %v3137_v43, %v3061_v6  ;;  %v4092_v14 = vpop.f32.mrb[43].mxu0 }
0x1070   :  { %v4194_v14 = vld [vmem:[%s5095_s11 + $0x28] sm:$0xff]  }
0x1071   :  { %4168 = vrot.lane.b32.xlu0 %v4167_v47, %s4388_s0  ;;  %v3213_v16 = vpop.f32.mrb[36].mxu1  ;;  %v4193_v47 = vld [vmem:[%s5095_s11 + $0x20] sm:$0xff]  }
0x1072   :  { %v3289_v17 = vpop.f32.mrb[44].mxu0  ;;  %v4097_v18 = vpop.f32.mrb[37].mxu1 }
0x1073   :  { %v4172_v19 = vpack.i.bf16 %v3289_v17, %v3213_v16  ;;  %v4102_v20 = vpop.f32.mrb[45].mxu0  ;;  %v4195_v16 = vld [vmem:[%s5095_s11 + $0x30] sm:$0xff]   ;;  %v4196_v17 = vld [vmem:[%s5095_s11 + $0x38] sm:$0xff]  }
0x1074   :  { %v3784_v18 = vld [vmem:[#allocation7 + $0x1] ss:$0 sm:$0xff] }
0x1075   :  { %4173 = vrot.lane.b32.xlu1 %v4172_v19, %s4397_s10 }
0x10df   :  { %v4164_v21 = vpop.permute.xlu1 %4163 }
0x10e0   :  { %v4166_v23 = vunpack.i.h.bf16 %v4164_v21  ;;  %v4165_v24 = vunpack.i.l.bf16 %v4164_v21 }
0x10e2   :  { %v3318_v28 = vsel %vm223_vm2, %v2833_v63, %v4166_v23  ;;  %v3317_v29 = vsel %vm223_vm2, %v2757_v1, %v4165_v24 }
0x10e3   :  { %v4169_v22 = vpop.permute.xlu0 %4168 }
0x10e4   :  { %v4171_v25 = vunpack.i.h.bf16 %v4169_v22  ;;  %v4170_v26 = vunpack.i.l.bf16 %v4169_v22 }
0x10e6   :  { %v3320_v32 = vsel %vm1560_vm3, %v3318_v28, %v4171_v25  ;;  %v3319_v33 = vsel %vm1560_vm3, %v3317_v29, %v4170_v26 }
0x10e7   :  { %v4174_v27 = vpop.permute.xlu1 %4173 }
0x10e8   :  { %v4176_v30 = vunpack.i.h.bf16 %v4174_v27  ;;  %v4175_v31 = vunpack.i.l.bf16 %v4174_v27 }
0x10ea   :  { %v3322_v34 = vsel %vm1563_vm4, %v3320_v32, %v4176_v30  ;;  %v3321_v35 = vsel %vm1563_vm4, %v3319_v33, %v4175_v31 }
0x10eb   :  { %v3323_v36 = vpack.c.bf16 %v3322_v34, %v3321_v35 }
0x10ed   :  { %4108 = vmatmul.mubr.msk.bf16.vlgmr.msra.gmra.mrb[40].mxu1 %vm95_vm0, %v3323_v36 }
0x10ee   :  { %4127 = vmatprep.mubr.msk.bf16.mxu1 %vm4391_vm1, %v4390_v15  ;;  %4120 = vmatpush3.bf16.msra.mxu1 %v4193_v47  ;;  %v3806_v47 = vld [vmem:[%s5098_s14 + $0x1] ss:$0 sm:$0xff] }
0x10ef   :  { %4121 = vmatprep.subr.bf16.mxu1 %v4390_v15 }
0x10f2   :  { %4122 = vmatpush3.bf16.msra.mxu1 %v4194_v14 }
0x10f3   :  { %4123 = vmatprep.subr.bf16.mxu1 %v4390_v15 }
0x10f6   :  { %4124 = vmatpush3.bf16.msra.mxu1 %v4195_v16 }
0x10f7   :  { %4125 = vmatprep.subr.bf16.mxu1 %v4390_v15 }
0x10fa   :  { %4126 = vmatpush3.bf16.msra.mxu1 %v4196_v17 }
0x11c0   :  { %v3386_v38 = vpop.f32.mrb[40].mxu1 }
0x11c1   :  { %v3387_v7 = vadd.f32 %v3772_v37, %v3386_v38  ;;  %v4109_v8 = vpop.f32.mrb[41].mxu1 }
0x11c2   :  { %v3389_v39 = vpop.f32.mrb[42].mxu1 }
0x11c3   :  { %v3390_v40 = vadd.f32 %v3772_v37, %v3389_v39  ;;  %v4110_v41 = vpop.f32.mrb[43].mxu1  ;;  %v3393_v42 = vadd.f32 %v3387_v7, %v4816_v57 }
0x11c4   :  { %v3797_v41 = vld [vmem:[%s5096_s12 + $0x1] ss:$0 sm:$0xff] }
0x11c5   :  { %v3399_v44 = vsel %vm95_vm0, %v3393_v42, 0.0  ;;  %v3394_v45 = vadd.f32 %v3390_v40, %v4818_v58  ;;  %v4191_v58 = vld [vmem:[%s5093_s9 + $0x10] sm:$0xff]  }
0x11c6   :  { %3400 = vadd.xlane.f32.xlu0 %v3399_v44  ;;  %4112 = vmatpush3.bf16.msra.mxu0 %v4191_v58 }
0x11c7   :  { %v3402_v46 = vsel %vm95_vm0, %v3394_v45, 0.0  ;;  %4113 = vmatprep.subr.bf16.mxu0 %v4390_v15 }
0x11c8   :  { %3403 = vadd.xlane.f32.xlu1 %v3402_v46 }
0x11ca   :  { %4114 = vmatpush3.bf16.msra.mxu0 %v4192_v59 }
0x1253   :  { %v3401_v48 = vpop.xlane.xlu0 %3400 }
0x1254   :  { %v3405_v49 = vmul.f32 0.03125, %v3401_v48 }
0x1255   :  { %v3404_v50 = vpop.xlane.xlu1 %3403 }
0x1256   :  { %v3407_v51 = vsub.f32 %v3393_v42, %v3405_v49  ;;  %v3406_v52 = vmul.f32 0.03125, %v3404_v50 }
0x1258   :  { %v3408_v53 = vsub.f32 %v3394_v45, %v3406_v52  ;;  %v3409_v54 = vmul.f32 %v3407_v51, %v3407_v51 }
0x125a   :  { %v3411_v55 = vsel %vm95_vm0, %v3409_v54, 0.0  ;;  %v3410_v56 = vmul.f32 %v3408_v53, %v3408_v53 }
0x125b   :  { %3412 = vadd.xlane.f32.xlu0 %v3411_v55 }
0x125c   :  { %v3414_v57 = vsel %vm95_vm0, %v3410_v56, 0.0 }
0x125f   :  { %3415 = vadd.xlane.f32.xlu0 %v3414_v57 }
0x12e8   :  { %v3413_v60 = vpop.xlane.xlu0 %3412 }
0x12e9   :  { %v3417_v61 = vmul.f32 0.03125, %v3413_v60 }
0x12eb   :  { %v3419_v62 = vadd.f32 1e-12, %v3417_v61 }
0x12ec   :  { %v3416_v63 = vpop.xlane.xlu0 %3415 }
0x12ed   :  { %4277 = vrsqrt.f32 %v3419_v62  ;;  %v3418_v0 = vmul.f32 0.03125, %v3416_v63 }
0x12ef   :  { %v3420_v1 = vadd.f32 1e-12, %v3418_v0 }
0x12f1   :  { %4279 = vrsqrt.f32 %v3420_v1 }
0x12f7   :  { %v4278_v2 = vpop.eup %4277 }
0x12f8   :  { %v3423_v3 = vmul.f32 %v4278_v2, %v3407_v51 }
0x12fa   :  { %v3431_v6 = vmul.f32 %v3778_v4, %v3423_v3 }
0x12fb   :  { %v4280_v5 = vpop.eup %4279 }
0x12fc   :  { %v3424_v9 = vmul.f32 %v4280_v5, %v3408_v53  ;;  %v3439_v12 = vadd.f32 %v3779_v10, %v3431_v6 }
0x12fe   :  { %v3432_v11 = vmul.f32 %v3778_v4, %v3424_v9 }
0x1300   :  { %v3440_v13 = vadd.f32 %v3779_v10, %v3432_v11  ;;  %v3805_v11 = vld [vmem:[%s5097_s13 + $0x1] ss:$0 sm:$0xff] }
0x1302   :  { %v3441_v43 = vpack.c.bf16 %v3440_v13, %v3439_v12 }
0x1304   :  { %4116 = vmatmul.mubr.msk.bf16.vlgmr.msra.gmra.mrb[48].mxu0 %vm95_vm0, %v3441_v43 }
0x13d7   :  { %v3504_v19 = vpop.f32.mrb[48].mxu0 }
0x13d8   :  { %v3505_v20 = vadd.f32 %v3784_v18, %v3504_v19  ;;  %v4117_v21 = vpop.f32.mrb[49].mxu0 }
0x13d9   :  { %v3507_v22 = vpop.f32.mrb[50].mxu0 }
0x13da   :  { %v3511_v23 = vmul.f32 %v3505_v20, %v3505_v20  ;;  %v3508_v24 = vadd.f32 %v3784_v18, %v3507_v22  ;;  %v4118_v25 = vpop.f32.mrb[51].mxu0 }
0x13dc   :  { %v3513_v26 = vmul.f32 %v3511_v23, %v3505_v20  ;;  %v3512_v27 = vmul.f32 %v3508_v24, %v3508_v24 }
0x13de   :  { %v3515_v28 = vmul.f32 0.044715, %v3513_v26  ;;  %v3514_v29 = vmul.f32 %v3512_v27, %v3508_v24 }
0x13e0   :  { %v3517_v30 = vadd.f32 %v3515_v28, %v3505_v20  ;;  %v3516_v31 = vmul.f32 0.044715, %v3514_v29 }
0x13e2   :  { %v3519_v15 = vmul.f32 0.7978846, %v3517_v30  ;;  %v3518_v32 = vadd.f32 %v3516_v31, %v3508_v24 }
0x13e4   :  { %4281 = vtanh.f32 %v3519_v15  ;;  %v3520_v33 = vmul.f32 0.7978846, %v3518_v32 }
0x13e6   :  { %4283 = vtanh.f32 %v3520_v33 }
0x13ee   :  { %v4282_v34 = vpop.eup %4281 }
0x13ef   :  { %v3523_v35 = vadd.f32 1.0, %v4282_v34 }
0x13f0   :  { %v4284_v36 = vpop.eup %4283 }
0x13f1   :  { %v3525_v37 = vmul.f32 0.5, %v3523_v35  ;;  %v3524_v38 = vadd.f32 1.0, %v4284_v36 }
0x13f3   :  { %v3526_v7 = vmul.f32 0.5, %v3524_v38  ;;  %v3527_v8 = vmul.f32 %v3525_v37, %v3505_v20 }
0x13f5   :  { %v3528_v39 = vmul.f32 %v3526_v7, %v3508_v24 }
0x13f7   :  { %v3529_v40 = vpack.c.bf16 %v3528_v39, %v3527_v8 }
0x13f9   :  { %4128 = vmatmul.mubr.msk.bf16.vlgmr.msra.gmra.mrb[44].mxu1 %vm1806_vm5, %v3529_v40 }
0x14cc   :  { %v3608_v42 = vpop.f32.mrb[44].mxu1 }
0x14cd   :  { %v3609_v44 = vadd.f32 %v3797_v41, %v3608_v42  ;;  %v4129_v45 = vpop.f32.mrb[45].mxu1 }
0x14ce   :  { %v3611_v46 = vpop.f32.mrb[46].mxu1 }
0x14cf   :  { %v3615_v48 = vadd.f32 %v3609_v44, %v3439_v12  ;;  %v3612_v49 = vadd.f32 %v3797_v41, %v3611_v46  ;;  %v4130_v50 = vpop.f32.mrb[47].mxu1 }
0x14d1   :  { %v3616_v51 = vadd.f32 %v3612_v49, %v3440_v13  ;;  %v3621_v52 = vsel %vm95_vm0, %v3615_v48, 0.0 }
0x14d2   :  { %3622 = vadd.xlane.f32.xlu1 %v3621_v52 }
0x14d3   :  { %v3624_v53 = vsel %vm95_vm0, %v3616_v51, 0.0 }
0x14d4   :  { %3625 = vadd.xlane.f32.xlu0 %v3624_v53 }
0x155f   :  { %v3623_v54 = vpop.xlane.xlu1 %3622 }
0x1560   :  { %v3627_v55 = vmul.f32 0.03125, %v3623_v54 }
0x1561   :  { %v3626_v56 = vpop.xlane.xlu0 %3625 }
0x1562   :  { %v3629_v57 = vsub.f32 %v3615_v48, %v3627_v55  ;;  %v3628_v58 = vmul.f32 0.03125, %v3626_v56 }
0x1564   :  { %v3630_v59 = vsub.f32 %v3616_v51, %v3628_v58  ;;  %v3631_v60 = vmul.f32 %v3629_v57, %v3629_v57 }
0x1566   :  { %v3633_v61 = vsel %vm95_vm0, %v3631_v60, 0.0  ;;  %v3632_v62 = vmul.f32 %v3630_v59, %v3630_v59 }
0x1567   :  { %3634 = vadd.xlane.f32.xlu1 %v3633_v61 }
0x1568   :  { %v3636_v63 = vsel %vm95_vm0, %v3632_v62, 0.0 }
0x1569   :  { %3637 = vadd.xlane.f32.xlu0 %v3636_v63 }
0x15f4   :  { %v3635_v0 = vpop.xlane.xlu1 %3634 }
0x15f5   :  { %v3639_v1 = vmul.f32 0.03125, %v3635_v0 }
0x15f6   :  { %v3638_v2 = vpop.xlane.xlu0 %3637 }
0x15f7   :  { %v3641_v3 = vadd.f32 1e-12, %v3639_v1  ;;  %v3640_v4 = vmul.f32 0.03125, %v3638_v2 }
0x15f9   :  { %4285 = vrsqrt.f32 %v3641_v3  ;;  %v3642_v5 = vadd.f32 1e-12, %v3640_v4 }
0x15fb   :  { %4287 = vrsqrt.f32 %v3642_v5 }
0x1603   :  { %v4286_v6 = vpop.eup %4285 }
0x1604   :  { %v3645_v9 = vmul.f32 %v4286_v6, %v3629_v57 }
0x1605   :  { %v4288_v10 = vpop.eup %4287 }
0x1606   :  { %v3646_v12 = vmul.f32 %v4288_v10, %v3630_v59  ;;  %v3653_v13 = vmul.f32 %v3805_v11, %v3645_v9 }
0x1608   :  { %v3654_v43 = vmul.f32 %v3805_v11, %v3646_v12  ;;  %v3661_v16 = vadd.f32 %v3806_v47, %v3653_v13 }
0x160a   :  { %v3662_v14 = vadd.f32 %v3806_v47, %v3654_v43 }
0x160c   :  { %v3664_v17 = vrot.slane %v3662_v14, 7 }
0x160e   :  { %v3667_v18 = vsel %vm3666_vm6, %v3661_v16, %v3664_v17 }
0x160f   :  { %3669 = vst.msk [vmem:[#allocation8] sm:$0x3] %vm3668_vm7, %v3667_v18 }
0x1610   :  { %4366 = shalt.err (!%p4363_p0)
}
0x1611   :  { %s4367_s14 = scalar_lea.hbm %s5099_s15, 32 }
0x1612   :  { %p4368_p1 = scmp.ne.s32.totalorder %s5099_s15, %s4367_s14  ;;  %p4371_p2 = scmp.lt.u32.totalorder %s4367_s14, %s5099_s15 }
0x1614   :  { %p4373_p3 = pnand %p4371_p2, %p4368_p1 }
0x1616   :  { %4376 = shalt.err (!%p4373_p3)
}
0x1617   :  { %3679 = dma.vmem_to_hbm [thread:$0]  %s3677_s1, 32, %s5099_s15, [#allocation4]  }
0x1618   :  { %4381 = dma.done.wait [#allocation4], 32  }
0x1619   :  { %4382 = vsyncadd [#allocation4], 4294967264 }
0x161a   :  { %3683 = vsyncpa [#allocation3], 1 }
0x161b   :  { %3684 = vsyncpa [#allocation6], 1 }
0x161c   :  { %3685 = vsyncpa [#allocation4], 1 }

</bundles_post_ra>
